<compile_context>
chip_gen: v6e
topology: v6e:2x2x1
jax: 0.10.0
libtpu: 0.0.40
codegen_flags: <defaults>
</compile_context>

<pallas_src>
import functools

import jax
import jax.numpy as jnp
from jax import lax
from jax.experimental import pallas as pl
from jax.experimental.pallas import tpu as pltpu

KH = KW = 5
STRIDE = 2
PAD = 2
NEG_SLOPE = 0.2


def _pick_row_block(oh, ow, target_m=256):
    """Rows per grid step: whole image when small, else ~target_m output pixels."""
    if oh * ow <= 2 * target_m:
        return oh
    blk = max(1, min(oh, target_m // max(1, ow)))
    while blk > 1 and (oh % blk != 0 or (blk * ow) % 8 != 0):
        blk -= 1
    if oh % blk != 0 or (blk * ow) % 8 != 0:
        return oh
    return blk


# ------------------------- Pallas kernel (per layer) -------------------------

def _dis_conv_kernel(x_ref, w_ref, b_ref, o_ref, acc_ref, *, ow, m_blk, has_row_axis):
    """Block of output rows of conv5x5 (stride 2, zero pad 2) + bias + LeakyReLU(0.2).

    x_ref:   (1, 2, A*OW, 5*Cin) bf16 -- row-phase decomposed, kj-folded input:
             x_ref[0, pi, a*OW + ow, kj*Cin + c] == x_pad[2a + pi, 2*ow + kj, c]
    w_ref:   (5, 5*Cin, Cout) bf16    -- w[ki, kj*Cin + c, co]
    b_ref:   (1, Cout) f32
    o_ref:   (1, M_BLK, Cout) bf16    -- flattened (oh, ow) output rows
    acc_ref: (M_BLK, Cout) f32 VMEM scratch accumulator
    """
    base = pl.program_id(1) * m_blk if has_row_axis else 0   # static 0 when grid=(N,)
    acc_ref[...] = jnp.zeros_like(acc_ref)
    for ki in range(KH):                                     # 5 dots, K = 5*Cin each
        start = base + (ki // 2) * ow
        if has_row_axis:
            start = pl.multiple_of(start, ow)
        lhs = x_ref[0, ki % 2, pl.ds(start, m_blk), :]       # (M, 5*Cin) bf16
        acc_ref[...] += jnp.dot(lhs, w_ref[ki, :, :],
                                preferred_element_type=jnp.float32)
    y = acc_ref[...] + b_ref[...]                            # bias add, f32
    y = jnp.where(y >= 0, y, NEG_SLOPE * y)                  # LeakyReLU(0.2), f32
    o_ref[0, :, :] = y.astype(o_ref.dtype)


# ------------------------------- layer wrapper --------------------------------

def dis_conv_layer(x_nhwc, w_hwio, b):
    """One dis_conv block: NHWC in, NHWC bf16 out (no channel padding)."""
    n, h, w, cin = x_nhwc.shape
    kh, kw, cin_w, cout = w_hwio.shape
    assert (kh, kw) == (KH, KW) and cin_w == cin

    oh = (h + 2 * PAD - KH) // STRIDE + 1
    ow = (w + 2 * PAD - KW) // STRIDE + 1
    a = oh + 2                       # rows per phase slab (2-row halo for the 5-tap window)
    k_fold = KW * cin                # kj folded into the contraction dim

    # --- glue (O(activation), cheap at these channel counts): zero pad, split rows
    #     by parity, fold the 5 kj taps into the channel dim, flatten (a, ow) so the
    #     kernel only ever takes unit-stride sublane slices of the VMEM tile.
    xb = x_nhwc.astype(jnp.bfloat16)
    xp = jnp.pad(xb, ((0, 0), (PAD, PAD + (h & 1)), (PAD, PAD + (w & 1)), (0, 0)))
    slabs = []
    for pi in range(2):
        taps = [xp[:, pi::2, kj:kj + 2 * ow:2, :] for kj in range(KW)]   # (n, a, ow, cin)
        slabs.append(jnp.stack(taps, axis=3).reshape(n, a * ow, k_fold))
    xr = jnp.stack(slabs, axis=1)                                        # (n, 2, a*ow, 5*cin)

    # --- weights/bias: HWIO -> (5, 5*Cin, Cout) bf16, bias (1, Cout) f32.
    wk = w_hwio.reshape(KH, k_fold, cout).astype(jnp.bfloat16)
    bk = b.reshape(1, cout).astype(jnp.float32)

    oh_blk = _pick_row_block(oh, ow)
    nblk = oh // oh_blk
    has_row_axis = nblk > 1
    m_blk = oh_blk * ow

    kernel = functools.partial(_dis_conv_kernel, ow=ow, m_blk=m_blk,
                               has_row_axis=has_row_axis)

    if has_row_axis:
        grid = (n, nblk)
        x_map = lambda i, j: (i, 0, 0, 0)
        w_map = lambda i, j: (0, 0, 0)
        b_map = lambda i, j: (0, 0)
        o_map = lambda i, j: (i, j, 0)
        dims = ("parallel", "parallel")
    else:
        grid = (n,)
        x_map = lambda i: (i, 0, 0, 0)
        w_map = lambda i: (0, 0, 0)
        b_map = lambda i: (0, 0)
        o_map = lambda i: (i, 0, 0)
        dims = ("parallel",)

    y = pl.pallas_call(
        kernel,
        out_shape=jax.ShapeDtypeStruct((n, oh * ow, cout), jnp.bfloat16),
        grid_spec=pltpu.PrefetchScalarGridSpec(
            num_scalar_prefetch=0,
            grid=grid,
            in_specs=[
                pl.BlockSpec((1, 2, a * ow, k_fold), x_map),   # per-batch phase slabs
                pl.BlockSpec((KH, k_fold, cout), w_map),       # grid-invariant weights
                pl.BlockSpec((1, cout), b_map),                # grid-invariant bias
            ],
            out_specs=pl.BlockSpec((1, m_blk, cout), o_map),
            scratch_shapes=[pltpu.VMEM((m_blk, cout), jnp.float32)],
        ),
        compiler_params=pltpu.CompilerParams(
            dimension_semantics=dims,
            vmem_limit_bytes=48 * 1024 * 1024,   # safe on v5e/v6e, headroom on v7x
        ),
    )(xr, wk, bk)
    return y.reshape(n, oh, ow, cout)


# ------------------------------- module forward --------------------------------

def init_params(key, input_dim, cnum):
    dims = [(input_dim, cnum), (cnum, 2 * cnum), (2 * cnum, 4 * cnum), (4 * cnum, 4 * cnum)]
    params = []
    for idx, (cin, cout) in enumerate(dims):
        w_key, b_key = jax.random.split(jax.random.fold_in(key, idx))
        fan_in = KH * KW * cin
        bound = 1.0 / jnp.sqrt(fan_in)
        w = jax.random.uniform(w_key, (KH, KW, cin, cout), jnp.float32, -bound, bound)
        b = jax.random.uniform(b_key, (cout,), jnp.float32, -bound, bound)
        params.append((w, b))
    return params


@jax.jit
def dis_conv_module(x_nchw, params):
    """DisConvModule forward. Input NCHW, output NCHW (to match PyTorch)."""
    x = jnp.transpose(x_nchw, (0, 2, 3, 1))              # NCHW -> NHWC
    for w, b in params:
        x = dis_conv_layer(x, w, b)                      # bf16 NHWC, unpadded channels
    x = x.astype(jnp.float32)
    return jnp.transpose(x, (0, 3, 1, 2))                # NHWC -> NCHW


# --------------------------------- reference -----------------------------------

def _reference(x_nchw, params):
    x = jnp.transpose(x_nchw, (0, 2, 3, 1))
    for w, b in params:
        y = lax.conv_general_dilated(
            x, w, window_strides=(STRIDE, STRIDE),
            padding=((PAD, PAD), (PAD, PAD)),
            dimension_numbers=("NHWC", "HWIO", "NHWC"))
        y = y + b[None, None, None, :]
        x = jnp.where(y >= 0, y, NEG_SLOPE * y)
    return jnp.transpose(x, (0, 3, 1, 2))


# ----------------------------------- main ---------------------------------------

if __name__ == "__main__":
    key = jax.random.PRNGKey(0)
    x_key, p_key = jax.random.split(key)

    input_dim, cnum = 4, 4
    x = jax.random.normal(x_key, (2, input_dim, 16, 16), dtype=jnp.float32)   # NCHW
    params = init_params(p_key, input_dim, cnum)

    out = jax.block_until_ready(dis_conv_module(x, params))
    assert out.shape == (2, 4 * cnum, 1, 1), out.shape    # (N, 4*cnum, H/16, W/16)

    ref = jax.block_until_ready(_reference(x, params))
    # bf16 MXU inputs / bf16 inter-layer activations (f32 accumulation) vs f32 XLA
    # conv reference over 4 layers -> bf16-level tolerance.
    assert jnp.allclose(out, ref, atol=3e-2, rtol=5e-2), float(jnp.max(jnp.abs(out - ref)))

    print("KERNEL_OK")
</pallas_src>

<mosaic_0001>
module attributes {stable_mosaic.version = 11 : i64} {
  func.func @_dis_conv_kernel(%arg0: i32, %arg1: memref<1x2x80x20xbf16, #tpu.memory_space<vmem>>, %arg2: memref<5x20x4xbf16, #tpu.memory_space<vmem>>, %arg3: memref<1x4xf32, #tpu.memory_space<vmem>>, %arg4: memref<1x64x4xbf16, #tpu.memory_space<vmem>>, %arg5: memref<64x4xf32, #tpu.memory_space<vmem>>) attributes {dimension_semantics = [#tpu.dimension_semantics<parallel>], iteration_bounds = array<i64: 2>, scalar_prefetch = 0 : i64, scratch_operands = 1 : i64, tpu.core_type = #tpu.core_type<tc>, window_params = [{transform_indices = @transform_0, window_bounds = array<i64: 1, 2, 80, 20>}, {pipeline_mode = #tpu.pipeline_mode<synchronous>, transform_indices = @transform_1, window_bounds = array<i64: 5, 20, 4>}, {pipeline_mode = #tpu.pipeline_mode<synchronous>, transform_indices = @transform_2, window_bounds = array<i64: 1, 4>}, {transform_indices = @transform_3, window_bounds = array<i64: 1, 64, 4>}]} {
    %cst = arith.constant 0.000000e+00 : f32
    %0 = vector.broadcast %cst : f32 to vector<64x4xf32>
    %c0 = arith.constant 0 : index
    %c0_0 = arith.constant 0 : index
    %1 = vector.load %arg5[%c0, %c0_0] : memref<64x4xf32, #tpu.memory_space<vmem>>, vector<64x4xf32>
    tpu.vector_store %arg5[%c0, %c0_0], %0 {strides = array<i32>} : memref<64x4xf32, #tpu.memory_space<vmem>>, vector<64x4xf32>,
    %c0_1 = arith.constant 0 : index
    %c0_2 = arith.constant 0 : index
    %c0_3 = arith.constant 0 : index
    %c0_4 = arith.constant 0 : index
    %2 = vector.load %arg1[%c0_1, %c0_2, %c0_3, %c0_4] : memref<1x2x80x20xbf16, #tpu.memory_space<vmem>>, vector<1x1x64x20xbf16>
    %3 = vector.shape_cast %2 : vector<1x1x64x20xbf16> to vector<64x20xbf16>
    %c0_5 = arith.constant 0 : index
    %c0_6 = arith.constant 0 : index
    %4 = vector.load %arg5[%c0_5, %c0_6] : memref<64x4xf32, #tpu.memory_space<vmem>>, vector<64x4xf32>
    %c0_7 = arith.constant 0 : index
    %c0_8 = arith.constant 0 : index
    %c0_9 = arith.constant 0 : index
    %5 = vector.load %arg2[%c0_7, %c0_8, %c0_9] : memref<5x20x4xbf16, #tpu.memory_space<vmem>>, vector<1x20x4xbf16>
    %6 = vector.shape_cast %5 : vector<1x20x4xbf16> to vector<20x4xbf16>
    %cst_10 = arith.constant dense<0.000000e+00> : vector<64x4xf32>
    %7 = tpu.matmul %3, %6, %cst_10 {dimension_numbers = #tpu.dot_dimension_numbers<[1], [0], [0], [1], [0, 0, 1, 1], [], []>} : vector<64x20xbf16>, vector<20x4xbf16>, vector<64x4xf32> -> vector<64x4xf32>
    %8 = arith.addf %4, %7 : vector<64x4xf32>
    %c0_11 = arith.constant 0 : index
    %c0_12 = arith.constant 0 : index
    %9 = vector.load %arg5[%c0_11, %c0_12] : memref<64x4xf32, #tpu.memory_space<vmem>>, vector<64x4xf32>
    tpu.vector_store %arg5[%c0_11, %c0_12], %8 {strides = array<i32>} : memref<64x4xf32, #tpu.memory_space<vmem>>, vector<64x4xf32>,
    %c0_13 = arith.constant 0 : index
    %c1 = arith.constant 1 : index
    %c0_14 = arith.constant 0 : index
    %c0_15 = arith.constant 0 : index
    %10 = vector.load %arg1[%c0_13, %c1, %c0_14, %c0_15] : memref<1x2x80x20xbf16, #tpu.memory_space<vmem>>, vector<1x1x64x20xbf16>
    %11 = vector.shape_cast %10 : vector<1x1x64x20xbf16> to vector<64x20xbf16>
    %c0_16 = arith.constant 0 : index
    %c0_17 = arith.constant 0 : index
    %12 = vector.load %arg5[%c0_16, %c0_17] : memref<64x4xf32, #tpu.memory_space<vmem>>, vector<64x4xf32>
    %c1_18 = arith.constant 1 : index
    %c0_19 = arith.constant 0 : index
    %c0_20 = arith.constant 0 : index
    %13 = vector.load %arg2[%c1_18, %c0_19, %c0_20] : memref<5x20x4xbf16, #tpu.memory_space<vmem>>, vector<1x20x4xbf16>
    %14 = vector.shape_cast %13 : vector<1x20x4xbf16> to vector<20x4xbf16>
    %cst_21 = arith.constant dense<0.000000e+00> : vector<64x4xf32>
    %15 = tpu.matmul %11, %14, %cst_21 {dimension_numbers = #tpu.dot_dimension_numbers<[1], [0], [0], [1], [0, 0, 1, 1], [], []>} : vector<64x20xbf16>, vector<20x4xbf16>, vector<64x4xf32> -> vector<64x4xf32>
    %16 = arith.addf %12, %15 : vector<64x4xf32>
    %c0_22 = arith.constant 0 : index
    %c0_23 = arith.constant 0 : index
    %17 = vector.load %arg5[%c0_22, %c0_23] : memref<64x4xf32, #tpu.memory_space<vmem>>, vector<64x4xf32>
    tpu.vector_store %arg5[%c0_22, %c0_23], %16 {strides = array<i32>} : memref<64x4xf32, #tpu.memory_space<vmem>>, vector<64x4xf32>,
    %c0_24 = arith.constant 0 : index
    %c0_25 = arith.constant 0 : index
    %c8 = arith.constant 8 : index
    %c0_26 = arith.constant 0 : index
    %18 = vector.load %arg1[%c0_24, %c0_25, %c8, %c0_26] : memref<1x2x80x20xbf16, #tpu.memory_space<vmem>>, vector<1x1x64x20xbf16>
    %19 = vector.shape_cast %18 : vector<1x1x64x20xbf16> to vector<64x20xbf16>
    %c0_27 = arith.constant 0 : index
    %c0_28 = arith.constant 0 : index
    %20 = vector.load %arg5[%c0_27, %c0_28] : memref<64x4xf32, #tpu.memory_space<vmem>>, vector<64x4xf32>
    %c2 = arith.constant 2 : index
    %c0_29 = arith.constant 0 : index
    %c0_30 = arith.constant 0 : index
    %21 = vector.load %arg2[%c2, %c0_29, %c0_30] : memref<5x20x4xbf16, #tpu.memory_space<vmem>>, vector<1x20x4xbf16>
    %22 = vector.shape_cast %21 : vector<1x20x4xbf16> to vector<20x4xbf16>
    %cst_31 = arith.constant dense<0.000000e+00> : vector<64x4xf32>
    %23 = tpu.matmul %19, %22, %cst_31 {dimension_numbers = #tpu.dot_dimension_numbers<[1], [0], [0], [1], [0, 0, 1, 1], [], []>} : vector<64x20xbf16>, vector<20x4xbf16>, vector<64x4xf32> -> vector<64x4xf32>
    %24 = arith.addf %20, %23 : vector<64x4xf32>
    %c0_32 = arith.constant 0 : index
    %c0_33 = arith.constant 0 : index
    %25 = vector.load %arg5[%c0_32, %c0_33] : memref<64x4xf32, #tpu.memory_space<vmem>>, vector<64x4xf32>
    tpu.vector_store %arg5[%c0_32, %c0_33], %24 {strides = array<i32>} : memref<64x4xf32, #tpu.memory_space<vmem>>, vector<64x4xf32>,
    %c0_34 = arith.constant 0 : index
    %c1_35 = arith.constant 1 : index
    %c8_36 = arith.constant 8 : index
    %c0_37 = arith.constant 0 : index
    %26 = vector.load %arg1[%c0_34, %c1_35, %c8_36, %c0_37] : memref<1x2x80x20xbf16, #tpu.memory_space<vmem>>, vector<1x1x64x20xbf16>
    %27 = vector.shape_cast %26 : vector<1x1x64x20xbf16> to vector<64x20xbf16>
    %c0_38 = arith.constant 0 : index
    %c0_39 = arith.constant 0 : index
    %28 = vector.load %arg5[%c0_38, %c0_39] : memref<64x4xf32, #tpu.memory_space<vmem>>, vector<64x4xf32>
    %c3 = arith.constant 3 : index
    %c0_40 = arith.constant 0 : index
    %c0_41 = arith.constant 0 : index
    %29 = vector.load %arg2[%c3, %c0_40, %c0_41] : memref<5x20x4xbf16, #tpu.memory_space<vmem>>, vector<1x20x4xbf16>
    %30 = vector.shape_cast %29 : vector<1x20x4xbf16> to vector<20x4xbf16>
    %cst_42 = arith.constant dense<0.000000e+00> : vector<64x4xf32>
    %31 = tpu.matmul %27, %30, %cst_42 {dimension_numbers = #tpu.dot_dimension_numbers<[1], [0], [0], [1], [0, 0, 1, 1], [], []>} : vector<64x20xbf16>, vector<20x4xbf16>, vector<64x4xf32> -> vector<64x4xf32>
    %32 = arith.addf %28, %31 : vector<64x4xf32>
    %c0_43 = arith.constant 0 : index
    %c0_44 = arith.constant 0 : index
    %33 = vector.load %arg5[%c0_43, %c0_44] : memref<64x4xf32, #tpu.memory_space<vmem>>, vector<64x4xf32>
    tpu.vector_store %arg5[%c0_43, %c0_44], %32 {strides = array<i32>} : memref<64x4xf32, #tpu.memory_space<vmem>>, vector<64x4xf32>,
    %c0_45 = arith.constant 0 : index
    %c0_46 = arith.constant 0 : index
    %c16 = arith.constant 16 : index
    %c0_47 = arith.constant 0 : index
    %34 = vector.load %arg1[%c0_45, %c0_46, %c16, %c0_47] : memref<1x2x80x20xbf16, #tpu.memory_space<vmem>>, vector<1x1x64x20xbf16>
    %35 = vector.shape_cast %34 : vector<1x1x64x20xbf16> to vector<64x20xbf16>
    %c0_48 = arith.constant 0 : index
    %c0_49 = arith.constant 0 : index
    %36 = vector.load %arg5[%c0_48, %c0_49] : memref<64x4xf32, #tpu.memory_space<vmem>>, vector<64x4xf32>
    %c4 = arith.constant 4 : index
    %c0_50 = arith.constant 0 : index
    %c0_51 = arith.constant 0 : index
    %37 = vector.load %arg2[%c4, %c0_50, %c0_51] : memref<5x20x4xbf16, #tpu.memory_space<vmem>>, vector<1x20x4xbf16>
    %38 = vector.shape_cast %37 : vector<1x20x4xbf16> to vector<20x4xbf16>
    %cst_52 = arith.constant dense<0.000000e+00> : vector<64x4xf32>
    %39 = tpu.matmul %35, %38, %cst_52 {dimension_numbers = #tpu.dot_dimension_numbers<[1], [0], [0], [1], [0, 0, 1, 1], [], []>} : vector<64x20xbf16>, vector<20x4xbf16>, vector<64x4xf32> -> vector<64x4xf32>
    %40 = arith.addf %36, %39 : vector<64x4xf32>
    %c0_53 = arith.constant 0 : index
    %c0_54 = arith.constant 0 : index
    %41 = vector.load %arg5[%c0_53, %c0_54] : memref<64x4xf32, #tpu.memory_space<vmem>>, vector<64x4xf32>
    tpu.vector_store %arg5[%c0_53, %c0_54], %40 {strides = array<i32>} : memref<64x4xf32, #tpu.memory_space<vmem>>, vector<64x4xf32>,
    %c0_55 = arith.constant 0 : index
    %c0_56 = arith.constant 0 : index
    %42 = vector.load %arg5[%c0_55, %c0_56] : memref<64x4xf32, #tpu.memory_space<vmem>>, vector<64x4xf32>
    %c0_57 = arith.constant 0 : index
    %c0_58 = arith.constant 0 : index
    %43 = vector.load %arg3[%c0_57, %c0_58] : memref<1x4xf32, #tpu.memory_space<vmem>>, vector<1x4xf32>
    %44 = vector.broadcast %43 : vector<1x4xf32> to vector<64x4xf32>
    %45 = arith.addf %42, %44 : vector<64x4xf32>
    %cst_59 = arith.constant 0.000000e+00 : f32
    %46 = vector.broadcast %cst_59 : f32 to vector<64x4xf32>
    %47 = arith.cmpf oge, %45, %46 : vector<64x4xf32>
    %cst_60 = arith.constant 2.000000e-01 : f32
    %48 = vector.broadcast %cst_60 : f32 to vector<64x4xf32>
    %49 = arith.mulf %48, %45 : vector<64x4xf32>
    %50 = arith.select %47, %45, %49 : vector<64x4xi1>, vector<64x4xf32>
    %51 = arith.truncf %50 : vector<64x4xf32> to vector<64x4xbf16>
    %c0_61 = arith.constant 0 : index
    %c0_62 = arith.constant 0 : index
    %c0_63 = arith.constant 0 : index
    %52 = vector.load %arg4[%c0_61, %c0_62, %c0_63] : memref<1x64x4xbf16, #tpu.memory_space<vmem>>, vector<1x64x4xbf16>
    %53 = vector.shape_cast %52 : vector<1x64x4xbf16> to vector<64x4xbf16>
    %54 = vector.shape_cast %51 : vector<64x4xbf16> to vector<1x64x4xbf16>
    tpu.vector_store %arg4[%c0_61, %c0_62, %c0_63], %54 {strides = array<i32>} : memref<1x64x4xbf16, #tpu.memory_space<vmem>>, vector<1x64x4xbf16>,
    return
  }
  func.func @transform_0(%arg0: i32) -> (i32, i32, i32, i32) {
    %c0_i32 = arith.constant 0 : i32
    %c0_i32_0 = arith.constant 0 : i32
    %c0_i32_1 = arith.constant 0 : i32
    %c0_i32_2 = arith.constant 0 : i32
    return %arg0, %c0_i32, %c0_i32_0, %c0_i32_1 : i32, i32, i32, i32
  }
  func.func @transform_1(%arg0: i32) -> (i32, i32, i32) {
    %c0_i32 = arith.constant 0 : i32
    %c0_i32_0 = arith.constant 0 : i32
    %c0_i32_1 = arith.constant 0 : i32
    %c0_i32_2 = arith.constant 0 : i32
    return %c0_i32, %c0_i32_0, %c0_i32_1 : i32, i32, i32
  }
  func.func @transform_2(%arg0: i32) -> (i32, i32) {
    %c0_i32 = arith.constant 0 : i32
    %c0_i32_0 = arith.constant 0 : i32
    %c0_i32_1 = arith.constant 0 : i32
    return %c0_i32, %c0_i32_0 : i32, i32
  }
  func.func @transform_3(%arg0: i32) -> (i32, i32, i32) {
    %c0_i32 = arith.constant 0 : i32
    %c0_i32_0 = arith.constant 0 : i32
    %c0_i32_1 = arith.constant 0 : i32
    return %arg0, %c0_i32, %c0_i32_0 : i32, i32, i32
  }
}

module attributes {stable_mosaic.version = 11 : i64} {
  func.func @_dis_conv_kernel(%arg0: i32, %arg1: memref<1x2x24x20xbf16, #tpu.memory_space<vmem>>, %arg2: memref<5x20x8xbf16, #tpu.memory_space<vmem>>, %arg3: memref<1x8xf32, #tpu.memory_space<vmem>>, %arg4: memref<1x16x8xbf16, #tpu.memory_space<vmem>>, %arg5: memref<16x8xf32, #tpu.memory_space<vmem>>) attributes {dimension_semantics = [#tpu.dimension_semantics<parallel>], iteration_bounds = array<i64: 2>, scalar_prefetch = 0 : i64, scratch_operands = 1 : i64, tpu.core_type = #tpu.core_type<tc>, window_params = [{transform_indices = @transform_0, window_bounds = array<i64: 1, 2, 24, 20>}, {pipeline_mode = #tpu.pipeline_mode<synchronous>, transform_indices = @transform_1, window_bounds = array<i64: 5, 20, 8>}, {pipeline_mode = #tpu.pipeline_mode<synchronous>, transform_indices = @transform_2, window_bounds = array<i64: 1, 8>}, {transform_indices = @transform_3, window_bounds = array<i64: 1, 16, 8>}]} {
    %cst = arith.constant 0.000000e+00 : f32
    %0 = vector.broadcast %cst : f32 to vector<16x8xf32>
    %c0 = arith.constant 0 : index
    %c0_0 = arith.constant 0 : index
    %1 = vector.load %arg5[%c0, %c0_0] : memref<16x8xf32, #tpu.memory_space<vmem>>, vector<16x8xf32>
    tpu.vector_store %arg5[%c0, %c0_0], %0 {strides = array<i32>} : memref<16x8xf32, #tpu.memory_space<vmem>>, vector<16x8xf32>,
    %c0_1 = arith.constant 0 : index
    %c0_2 = arith.constant 0 : index
    %c0_3 = arith.constant 0 : index
    %c0_4 = arith.constant 0 : index
    %2 = vector.load %arg1[%c0_1, %c0_2, %c0_3, %c0_4] : memref<1x2x24x20xbf16, #tpu.memory_space<vmem>>, vector<1x1x16x20xbf16>
    %3 = vector.shape_cast %2 : vector<1x1x16x20xbf16> to vector<16x20xbf16>
    %c0_5 = arith.constant 0 : index
    %c0_6 = arith.constant 0 : index
    %4 = vector.load %arg5[%c0_5, %c0_6] : memref<16x8xf32, #tpu.memory_space<vmem>>, vector<16x8xf32>
    %c0_7 = arith.constant 0 : index
    %c0_8 = arith.constant 0 : index
    %c0_9 = arith.constant 0 : index
    %5 = vector.load %arg2[%c0_7, %c0_8, %c0_9] : memref<5x20x8xbf16, #tpu.memory_space<vmem>>, vector<1x20x8xbf16>
    %6 = vector.shape_cast %5 : vector<1x20x8xbf16> to vector<20x8xbf16>
    %cst_10 = arith.constant dense<0.000000e+00> : vector<16x8xf32>
    %7 = tpu.matmul %3, %6, %cst_10 {dimension_numbers = #tpu.dot_dimension_numbers<[1], [0], [0], [1], [0, 0, 1, 1], [], []>} : vector<16x20xbf16>, vector<20x8xbf16>, vector<16x8xf32> -> vector<16x8xf32>
    %8 = arith.addf %4, %7 : vector<16x8xf32>
    %c0_11 = arith.constant 0 : index
    %c0_12 = arith.constant 0 : index
    %9 = vector.load %arg5[%c0_11, %c0_12] : memref<16x8xf32, #tpu.memory_space<vmem>>, vector<16x8xf32>
    tpu.vector_store %arg5[%c0_11, %c0_12], %8 {strides = array<i32>} : memref<16x8xf32, #tpu.memory_space<vmem>>, vector<16x8xf32>,
    %c0_13 = arith.constant 0 : index
    %c1 = arith.constant 1 : index
    %c0_14 = arith.constant 0 : index
    %c0_15 = arith.constant 0 : index
    %10 = vector.load %arg1[%c0_13, %c1, %c0_14, %c0_15] : memref<1x2x24x20xbf16, #tpu.memory_space<vmem>>, vector<1x1x16x20xbf16>
    %11 = vector.shape_cast %10 : vector<1x1x16x20xbf16> to vector<16x20xbf16>
    %c0_16 = arith.constant 0 : index
    %c0_17 = arith.constant 0 : index
    %12 = vector.load %arg5[%c0_16, %c0_17] : memref<16x8xf32, #tpu.memory_space<vmem>>, vector<16x8xf32>
    %c1_18 = arith.constant 1 : index
    %c0_19 = arith.constant 0 : index
    %c0_20 = arith.constant 0 : index
    %13 = vector.load %arg2[%c1_18, %c0_19, %c0_20] : memref<5x20x8xbf16, #tpu.memory_space<vmem>>, vector<1x20x8xbf16>
    %14 = vector.shape_cast %13 : vector<1x20x8xbf16> to vector<20x8xbf16>
    %cst_21 = arith.constant dense<0.000000e+00> : vector<16x8xf32>
    %15 = tpu.matmul %11, %14, %cst_21 {dimension_numbers = #tpu.dot_dimension_numbers<[1], [0], [0], [1], [0, 0, 1, 1], [], []>} : vector<16x20xbf16>, vector<20x8xbf16>, vector<16x8xf32> -> vector<16x8xf32>
    %16 = arith.addf %12, %15 : vector<16x8xf32>
    %c0_22 = arith.constant 0 : index
    %c0_23 = arith.constant 0 : index
    %17 = vector.load %arg5[%c0_22, %c0_23] : memref<16x8xf32, #tpu.memory_space<vmem>>, vector<16x8xf32>
    tpu.vector_store %arg5[%c0_22, %c0_23], %16 {strides = array<i32>} : memref<16x8xf32, #tpu.memory_space<vmem>>, vector<16x8xf32>,
    %c0_24 = arith.constant 0 : index
    %c0_25 = arith.constant 0 : index
    %c4 = arith.constant 4 : index
    %c0_26 = arith.constant 0 : index
    %18 = vector.load %arg1[%c0_24, %c0_25, %c4, %c0_26] : memref<1x2x24x20xbf16, #tpu.memory_space<vmem>>, vector<1x1x16x20xbf16>
    %19 = vector.shape_cast %18 : vector<1x1x16x20xbf16> to vector<16x20xbf16>
    %c0_27 = arith.constant 0 : index
    %c0_28 = arith.constant 0 : index
    %20 = vector.load %arg5[%c0_27, %c0_28] : memref<16x8xf32, #tpu.memory_space<vmem>>, vector<16x8xf32>
    %c2 = arith.constant 2 : index
    %c0_29 = arith.constant 0 : index
    %c0_30 = arith.constant 0 : index
    %21 = vector.load %arg2[%c2, %c0_29, %c0_30] : memref<5x20x8xbf16, #tpu.memory_space<vmem>>, vector<1x20x8xbf16>
    %22 = vector.shape_cast %21 : vector<1x20x8xbf16> to vector<20x8xbf16>
    %cst_31 = arith.constant dense<0.000000e+00> : vector<16x8xf32>
    %23 = tpu.matmul %19, %22, %cst_31 {dimension_numbers = #tpu.dot_dimension_numbers<[1], [0], [0], [1], [0, 0, 1, 1], [], []>} : vector<16x20xbf16>, vector<20x8xbf16>, vector<16x8xf32> -> vector<16x8xf32>
    %24 = arith.addf %20, %23 : vector<16x8xf32>
    %c0_32 = arith.constant 0 : index
    %c0_33 = arith.constant 0 : index
    %25 = vector.load %arg5[%c0_32, %c0_33] : memref<16x8xf32, #tpu.memory_space<vmem>>, vector<16x8xf32>
    tpu.vector_store %arg5[%c0_32, %c0_33], %24 {strides = array<i32>} : memref<16x8xf32, #tpu.memory_space<vmem>>, vector<16x8xf32>,
    %c0_34 = arith.constant 0 : index
    %c1_35 = arith.constant 1 : index
    %c4_36 = arith.constant 4 : index
    %c0_37 = arith.constant 0 : index
    %26 = vector.load %arg1[%c0_34, %c1_35, %c4_36, %c0_37] : memref<1x2x24x20xbf16, #tpu.memory_space<vmem>>, vector<1x1x16x20xbf16>
    %27 = vector.shape_cast %26 : vector<1x1x16x20xbf16> to vector<16x20xbf16>
    %c0_38 = arith.constant 0 : index
    %c0_39 = arith.constant 0 : index
    %28 = vector.load %arg5[%c0_38, %c0_39] : memref<16x8xf32, #tpu.memory_space<vmem>>, vector<16x8xf32>
    %c3 = arith.constant 3 : index
    %c0_40 = arith.constant 0 : index
    %c0_41 = arith.constant 0 : index
    %29 = vector.load %arg2[%c3, %c0_40, %c0_41] : memref<5x20x8xbf16, #tpu.memory_space<vmem>>, vector<1x20x8xbf16>
    %30 = vector.shape_cast %29 : vector<1x20x8xbf16> to vector<20x8xbf16>
    %cst_42 = arith.constant dense<0.000000e+00> : vector<16x8xf32>
    %31 = tpu.matmul %27, %30, %cst_42 {dimension_numbers = #tpu.dot_dimension_numbers<[1], [0], [0], [1], [0, 0, 1, 1], [], []>} : vector<16x20xbf16>, vector<20x8xbf16>, vector<16x8xf32> -> vector<16x8xf32>
    %32 = arith.addf %28, %31 : vector<16x8xf32>
    %c0_43 = arith.constant 0 : index
    %c0_44 = arith.constant 0 : index
    %33 = vector.load %arg5[%c0_43, %c0_44] : memref<16x8xf32, #tpu.memory_space<vmem>>, vector<16x8xf32>
    tpu.vector_store %arg5[%c0_43, %c0_44], %32 {strides = array<i32>} : memref<16x8xf32, #tpu.memory_space<vmem>>, vector<16x8xf32>,
    %c0_45 = arith.constant 0 : index
    %c0_46 = arith.constant 0 : index
    %c8 = arith.constant 8 : index
    %c0_47 = arith.constant 0 : index
    %34 = vector.load %arg1[%c0_45, %c0_46, %c8, %c0_47] : memref<1x2x24x20xbf16, #tpu.memory_space<vmem>>, vector<1x1x16x20xbf16>
    %35 = vector.shape_cast %34 : vector<1x1x16x20xbf16> to vector<16x20xbf16>
    %c0_48 = arith.constant 0 : index
    %c0_49 = arith.constant 0 : index
    %36 = vector.load %arg5[%c0_48, %c0_49] : memref<16x8xf32, #tpu.memory_space<vmem>>, vector<16x8xf32>
    %c4_50 = arith.constant 4 : index
    %c0_51 = arith.constant 0 : index
    %c0_52 = arith.constant 0 : index
    %37 = vector.load %arg2[%c4_50, %c0_51, %c0_52] : memref<5x20x8xbf16, #tpu.memory_space<vmem>>, vector<1x20x8xbf16>
    %38 = vector.shape_cast %37 : vector<1x20x8xbf16> to vector<20x8xbf16>
    %cst_53 = arith.constant dense<0.000000e+00> : vector<16x8xf32>
    %39 = tpu.matmul %35, %38, %cst_53 {dimension_numbers = #tpu.dot_dimension_numbers<[1], [0], [0], [1], [0, 0, 1, 1], [], []>} : vector<16x20xbf16>, vector<20x8xbf16>, vector<16x8xf32> -> vector<16x8xf32>
    %40 = arith.addf %36, %39 : vector<16x8xf32>
    %c0_54 = arith.constant 0 : index
    %c0_55 = arith.constant 0 : index
    %41 = vector.load %arg5[%c0_54, %c0_55] : memref<16x8xf32, #tpu.memory_space<vmem>>, vector<16x8xf32>
    tpu.vector_store %arg5[%c0_54, %c0_55], %40 {strides = array<i32>} : memref<16x8xf32, #tpu.memory_space<vmem>>, vector<16x8xf32>,
    %c0_56 = arith.constant 0 : index
    %c0_57 = arith.constant 0 : index
    %42 = vector.load %arg5[%c0_56, %c0_57] : memref<16x8xf32, #tpu.memory_space<vmem>>, vector<16x8xf32>
    %c0_58 = arith.constant 0 : index
    %c0_59 = arith.constant 0 : index
    %43 = vector.load %arg3[%c0_58, %c0_59] : memref<1x8xf32, #tpu.memory_space<vmem>>, vector<1x8xf32>
    %44 = vector.broadcast %43 : vector<1x8xf32> to vector<16x8xf32>
    %45 = arith.addf %42, %44 : vector<16x8xf32>
    %cst_60 = arith.constant 0.000000e+00 : f32
    %46 = vector.broadcast %cst_60 : f32 to vector<16x8xf32>
    %47 = arith.cmpf oge, %45, %46 : vector<16x8xf32>
    %cst_61 = arith.constant 2.000000e-01 : f32
    %48 = vector.broadcast %cst_61 : f32 to vector<16x8xf32>
    %49 = arith.mulf %48, %45 : vector<16x8xf32>
    %50 = arith.select %47, %45, %49 : vector<16x8xi1>, vector<16x8xf32>
    %51 = arith.truncf %50 : vector<16x8xf32> to vector<16x8xbf16>
    %c0_62 = arith.constant 0 : index
    %c0_63 = arith.constant 0 : index
    %c0_64 = arith.constant 0 : index
    %52 = vector.load %arg4[%c0_62, %c0_63, %c0_64] : memref<1x16x8xbf16, #tpu.memory_space<vmem>>, vector<1x16x8xbf16>
    %53 = vector.shape_cast %52 : vector<1x16x8xbf16> to vector<16x8xbf16>
    %54 = vector.shape_cast %51 : vector<16x8xbf16> to vector<1x16x8xbf16>
    tpu.vector_store %arg4[%c0_62, %c0_63, %c0_64], %54 {strides = array<i32>} : memref<1x16x8xbf16, #tpu.memory_space<vmem>>, vector<1x16x8xbf16>,
    return
  }
  func.func @transform_0(%arg0: i32) -> (i32, i32, i32, i32) {
    %c0_i32 = arith.constant 0 : i32
    %c0_i32_0 = arith.constant 0 : i32
    %c0_i32_1 = arith.constant 0 : i32
    %c0_i32_2 = arith.constant 0 : i32
    return %arg0, %c0_i32, %c0_i32_0, %c0_i32_1 : i32, i32, i32, i32
  }
  func.func @transform_1(%arg0: i32) -> (i32, i32, i32) {
    %c0_i32 = arith.constant 0 : i32
    %c0_i32_0 = arith.constant 0 : i32
    %c0_i32_1 = arith.constant 0 : i32
    %c0_i32_2 = arith.constant 0 : i32
    return %c0_i32, %c0_i32_0, %c0_i32_1 : i32, i32, i32
  }
  func.func @transform_2(%arg0: i32) -> (i32, i32) {
    %c0_i32 = arith.constant 0 : i32
    %c0_i32_0 = arith.constant 0 : i32
    %c0_i32_1 = arith.constant 0 : i32
    return %c0_i32, %c0_i32_0 : i32, i32
  }
  func.func @transform_3(%arg0: i32) -> (i32, i32, i32) {
    %c0_i32 = arith.constant 0 : i32
    %c0_i32_0 = arith.constant 0 : i32
    %c0_i32_1 = arith.constant 0 : i32
    return %arg0, %c0_i32, %c0_i32_0 : i32, i32, i32
  }
}

module attributes {stable_mosaic.version = 11 : i64} {
  func.func @_dis_conv_kernel(%arg0: i32, %arg1: memref<1x2x8x40xbf16, #tpu.memory_space<vmem>>, %arg2: memref<5x40x16xbf16, #tpu.memory_space<vmem>>, %arg3: memref<1x16xf32, #tpu.memory_space<vmem>>, %arg4: memref<1x4x16xbf16, #tpu.memory_space<vmem>>, %arg5: memref<4x16xf32, #tpu.memory_space<vmem>>) attributes {dimension_semantics = [#tpu.dimension_semantics<parallel>], iteration_bounds = array<i64: 2>, scalar_prefetch = 0 : i64, scratch_operands = 1 : i64, tpu.core_type = #tpu.core_type<tc>, window_params = [{transform_indices = @transform_0, window_bounds = array<i64: 1, 2, 8, 40>}, {pipeline_mode = #tpu.pipeline_mode<synchronous>, transform_indices = @transform_1, window_bounds = array<i64: 5, 40, 16>}, {pipeline_mode = #tpu.pipeline_mode<synchronous>, transform_indices = @transform_2, window_bounds = array<i64: 1, 16>}, {transform_indices = @transform_3, window_bounds = array<i64: 1, 4, 16>}]} {
    %cst = arith.constant 0.000000e+00 : f32
    %0 = vector.broadcast %cst : f32 to vector<4x16xf32>
    %c0 = arith.constant 0 : index
    %c0_0 = arith.constant 0 : index
    %1 = vector.load %arg5[%c0, %c0_0] : memref<4x16xf32, #tpu.memory_space<vmem>>, vector<4x16xf32>
    tpu.vector_store %arg5[%c0, %c0_0], %0 {strides = array<i32>} : memref<4x16xf32, #tpu.memory_space<vmem>>, vector<4x16xf32>,
    %c0_1 = arith.constant 0 : index
    %c0_2 = arith.constant 0 : index
    %c0_3 = arith.constant 0 : index
    %c0_4 = arith.constant 0 : index
    %2 = vector.load %arg1[%c0_1, %c0_2, %c0_3, %c0_4] : memref<1x2x8x40xbf16, #tpu.memory_space<vmem>>, vector<1x1x4x40xbf16>
    %3 = vector.shape_cast %2 : vector<1x1x4x40xbf16> to vector<4x40xbf16>
    %c0_5 = arith.constant 0 : index
    %c0_6 = arith.constant 0 : index
    %4 = vector.load %arg5[%c0_5, %c0_6] : memref<4x16xf32, #tpu.memory_space<vmem>>, vector<4x16xf32>
    %c0_7 = arith.constant 0 : index
    %c0_8 = arith.constant 0 : index
    %c0_9 = arith.constant 0 : index
    %5 = vector.load %arg2[%c0_7, %c0_8, %c0_9] : memref<5x40x16xbf16, #tpu.memory_space<vmem>>, vector<1x40x16xbf16>
    %6 = vector.shape_cast %5 : vector<1x40x16xbf16> to vector<40x16xbf16>
    %cst_10 = arith.constant dense<0.000000e+00> : vector<4x16xf32>
    %7 = tpu.matmul %3, %6, %cst_10 {dimension_numbers = #tpu.dot_dimension_numbers<[1], [0], [0], [1], [0, 0, 1, 1], [], []>} : vector<4x40xbf16>, vector<40x16xbf16>, vector<4x16xf32> -> vector<4x16xf32>
    %8 = arith.addf %4, %7 : vector<4x16xf32>
    %c0_11 = arith.constant 0 : index
    %c0_12 = arith.constant 0 : index
    %9 = vector.load %arg5[%c0_11, %c0_12] : memref<4x16xf32, #tpu.memory_space<vmem>>, vector<4x16xf32>
    tpu.vector_store %arg5[%c0_11, %c0_12], %8 {strides = array<i32>} : memref<4x16xf32, #tpu.memory_space<vmem>>, vector<4x16xf32>,
    %c0_13 = arith.constant 0 : index
    %c1 = arith.constant 1 : index
    %c0_14 = arith.constant 0 : index
    %c0_15 = arith.constant 0 : index
    %10 = vector.load %arg1[%c0_13, %c1, %c0_14, %c0_15] : memref<1x2x8x40xbf16, #tpu.memory_space<vmem>>, vector<1x1x4x40xbf16>
    %11 = vector.shape_cast %10 : vector<1x1x4x40xbf16> to vector<4x40xbf16>
    %c0_16 = arith.constant 0 : index
    %c0_17 = arith.constant 0 : index
    %12 = vector.load %arg5[%c0_16, %c0_17] : memref<4x16xf32, #tpu.memory_space<vmem>>, vector<4x16xf32>
    %c1_18 = arith.constant 1 : index
    %c0_19 = arith.constant 0 : index
    %c0_20 = arith.constant 0 : index
    %13 = vector.load %arg2[%c1_18, %c0_19, %c0_20] : memref<5x40x16xbf16, #tpu.memory_space<vmem>>, vector<1x40x16xbf16>
    %14 = vector.shape_cast %13 : vector<1x40x16xbf16> to vector<40x16xbf16>
    %cst_21 = arith.constant dense<0.000000e+00> : vector<4x16xf32>
    %15 = tpu.matmul %11, %14, %cst_21 {dimension_numbers = #tpu.dot_dimension_numbers<[1], [0], [0], [1], [0, 0, 1, 1], [], []>} : vector<4x40xbf16>, vector<40x16xbf16>, vector<4x16xf32> -> vector<4x16xf32>
    %16 = arith.addf %12, %15 : vector<4x16xf32>
    %c0_22 = arith.constant 0 : index
    %c0_23 = arith.constant 0 : index
    %17 = vector.load %arg5[%c0_22, %c0_23] : memref<4x16xf32, #tpu.memory_space<vmem>>, vector<4x16xf32>
    tpu.vector_store %arg5[%c0_22, %c0_23], %16 {strides = array<i32>} : memref<4x16xf32, #tpu.memory_space<vmem>>, vector<4x16xf32>,
    %c0_24 = arith.constant 0 : index
    %c0_25 = arith.constant 0 : index
    %c2 = arith.constant 2 : index
    %c0_26 = arith.constant 0 : index
    %18 = vector.load %arg1[%c0_24, %c0_25, %c2, %c0_26] : memref<1x2x8x40xbf16, #tpu.memory_space<vmem>>, vector<1x1x4x40xbf16>
    %19 = vector.shape_cast %18 : vector<1x1x4x40xbf16> to vector<4x40xbf16>
    %c0_27 = arith.constant 0 : index
    %c0_28 = arith.constant 0 : index
    %20 = vector.load %arg5[%c0_27, %c0_28] : memref<4x16xf32, #tpu.memory_space<vmem>>, vector<4x16xf32>
    %c2_29 = arith.constant 2 : index
    %c0_30 = arith.constant 0 : index
    %c0_31 = arith.constant 0 : index
    %21 = vector.load %arg2[%c2_29, %c0_30, %c0_31] : memref<5x40x16xbf16, #tpu.memory_space<vmem>>, vector<1x40x16xbf16>
    %22 = vector.shape_cast %21 : vector<1x40x16xbf16> to vector<40x16xbf16>
    %cst_32 = arith.constant dense<0.000000e+00> : vector<4x16xf32>
    %23 = tpu.matmul %19, %22, %cst_32 {dimension_numbers = #tpu.dot_dimension_numbers<[1], [0], [0], [1], [0, 0, 1, 1], [], []>} : vector<4x40xbf16>, vector<40x16xbf16>, vector<4x16xf32> -> vector<4x16xf32>
    %24 = arith.addf %20, %23 : vector<4x16xf32>
    %c0_33 = arith.constant 0 : index
    %c0_34 = arith.constant 0 : index
    %25 = vector.load %arg5[%c0_33, %c0_34] : memref<4x16xf32, #tpu.memory_space<vmem>>, vector<4x16xf32>
    tpu.vector_store %arg5[%c0_33, %c0_34], %24 {strides = array<i32>} : memref<4x16xf32, #tpu.memory_space<vmem>>, vector<4x16xf32>,
    %c0_35 = arith.constant 0 : index
    %c1_36 = arith.constant 1 : index
    %c2_37 = arith.constant 2 : index
    %c0_38 = arith.constant 0 : index
    %26 = vector.load %arg1[%c0_35, %c1_36, %c2_37, %c0_38] : memref<1x2x8x40xbf16, #tpu.memory_space<vmem>>, vector<1x1x4x40xbf16>
    %27 = vector.shape_cast %26 : vector<1x1x4x40xbf16> to vector<4x40xbf16>
    %c0_39 = arith.constant 0 : index
    %c0_40 = arith.constant 0 : index
    %28 = vector.load %arg5[%c0_39, %c0_40] : memref<4x16xf32, #tpu.memory_space<vmem>>, vector<4x16xf32>
    %c3 = arith.constant 3 : index
    %c0_41 = arith.constant 0 : index
    %c0_42 = arith.constant 0 : index
    %29 = vector.load %arg2[%c3, %c0_41, %c0_42] : memref<5x40x16xbf16, #tpu.memory_space<vmem>>, vector<1x40x16xbf16>
    %30 = vector.shape_cast %29 : vector<1x40x16xbf16> to vector<40x16xbf16>
    %cst_43 = arith.constant dense<0.000000e+00> : vector<4x16xf32>
    %31 = tpu.matmul %27, %30, %cst_43 {dimension_numbers = #tpu.dot_dimension_numbers<[1], [0], [0], [1], [0, 0, 1, 1], [], []>} : vector<4x40xbf16>, vector<40x16xbf16>, vector<4x16xf32> -> vector<4x16xf32>
    %32 = arith.addf %28, %31 : vector<4x16xf32>
    %c0_44 = arith.constant 0 : index
    %c0_45 = arith.constant 0 : index
    %33 = vector.load %arg5[%c0_44, %c0_45] : memref<4x16xf32, #tpu.memory_space<vmem>>, vector<4x16xf32>
    tpu.vector_store %arg5[%c0_44, %c0_45], %32 {strides = array<i32>} : memref<4x16xf32, #tpu.memory_space<vmem>>, vector<4x16xf32>,
    %c0_46 = arith.constant 0 : index
    %c0_47 = arith.constant 0 : index
    %c4 = arith.constant 4 : index
    %c0_48 = arith.constant 0 : index
    %34 = vector.load %arg1[%c0_46, %c0_47, %c4, %c0_48] : memref<1x2x8x40xbf16, #tpu.memory_space<vmem>>, vector<1x1x4x40xbf16>
    %35 = vector.shape_cast %34 : vector<1x1x4x40xbf16> to vector<4x40xbf16>
    %c0_49 = arith.constant 0 : index
    %c0_50 = arith.constant 0 : index
    %36 = vector.load %arg5[%c0_49, %c0_50] : memref<4x16xf32, #tpu.memory_space<vmem>>, vector<4x16xf32>
    %c4_51 = arith.constant 4 : index
    %c0_52 = arith.constant 0 : index
    %c0_53 = arith.constant 0 : index
    %37 = vector.load %arg2[%c4_51, %c0_52, %c0_53] : memref<5x40x16xbf16, #tpu.memory_space<vmem>>, vector<1x40x16xbf16>
    %38 = vector.shape_cast %37 : vector<1x40x16xbf16> to vector<40x16xbf16>
    %cst_54 = arith.constant dense<0.000000e+00> : vector<4x16xf32>
    %39 = tpu.matmul %35, %38, %cst_54 {dimension_numbers = #tpu.dot_dimension_numbers<[1], [0], [0], [1], [0, 0, 1, 1], [], []>} : vector<4x40xbf16>, vector<40x16xbf16>, vector<4x16xf32> -> vector<4x16xf32>
    %40 = arith.addf %36, %39 : vector<4x16xf32>
    %c0_55 = arith.constant 0 : index
    %c0_56 = arith.constant 0 : index
    %41 = vector.load %arg5[%c0_55, %c0_56] : memref<4x16xf32, #tpu.memory_space<vmem>>, vector<4x16xf32>
    tpu.vector_store %arg5[%c0_55, %c0_56], %40 {strides = array<i32>} : memref<4x16xf32, #tpu.memory_space<vmem>>, vector<4x16xf32>,
    %c0_57 = arith.constant 0 : index
    %c0_58 = arith.constant 0 : index
    %42 = vector.load %arg5[%c0_57, %c0_58] : memref<4x16xf32, #tpu.memory_space<vmem>>, vector<4x16xf32>
    %c0_59 = arith.constant 0 : index
    %c0_60 = arith.constant 0 : index
    %43 = vector.load %arg3[%c0_59, %c0_60] : memref<1x16xf32, #tpu.memory_space<vmem>>, vector<1x16xf32>
    %44 = vector.broadcast %43 : vector<1x16xf32> to vector<4x16xf32>
    %45 = arith.addf %42, %44 : vector<4x16xf32>
    %cst_61 = arith.constant 0.000000e+00 : f32
    %46 = vector.broadcast %cst_61 : f32 to vector<4x16xf32>
    %47 = arith.cmpf oge, %45, %46 : vector<4x16xf32>
    %cst_62 = arith.constant 2.000000e-01 : f32
    %48 = vector.broadcast %cst_62 : f32 to vector<4x16xf32>
    %49 = arith.mulf %48, %45 : vector<4x16xf32>
    %50 = arith.select %47, %45, %49 : vector<4x16xi1>, vector<4x16xf32>
    %51 = arith.truncf %50 : vector<4x16xf32> to vector<4x16xbf16>
    %c0_63 = arith.constant 0 : index
    %c0_64 = arith.constant 0 : index
    %c0_65 = arith.constant 0 : index
    %52 = vector.load %arg4[%c0_63, %c0_64, %c0_65] : memref<1x4x16xbf16, #tpu.memory_space<vmem>>, vector<1x4x16xbf16>
    %53 = vector.shape_cast %52 : vector<1x4x16xbf16> to vector<4x16xbf16>
    %54 = vector.shape_cast %51 : vector<4x16xbf16> to vector<1x4x16xbf16>
    tpu.vector_store %arg4[%c0_63, %c0_64, %c0_65], %54 {strides = array<i32>} : memref<1x4x16xbf16, #tpu.memory_space<vmem>>, vector<1x4x16xbf16>,
    return
  }
  func.func @transform_0(%arg0: i32) -> (i32, i32, i32, i32) {
    %c0_i32 = arith.constant 0 : i32
    %c0_i32_0 = arith.constant 0 : i32
    %c0_i32_1 = arith.constant 0 : i32
    %c0_i32_2 = arith.constant 0 : i32
    return %arg0, %c0_i32, %c0_i32_0, %c0_i32_1 : i32, i32, i32, i32
  }
  func.func @transform_1(%arg0: i32) -> (i32, i32, i32) {
    %c0_i32 = arith.constant 0 : i32
    %c0_i32_0 = arith.constant 0 : i32
    %c0_i32_1 = arith.constant 0 : i32
    %c0_i32_2 = arith.constant 0 : i32
    return %c0_i32, %c0_i32_0, %c0_i32_1 : i32, i32, i32
  }
  func.func @transform_2(%arg0: i32) -> (i32, i32) {
    %c0_i32 = arith.constant 0 : i32
    %c0_i32_0 = arith.constant 0 : i32
    %c0_i32_1 = arith.constant 0 : i32
    return %c0_i32, %c0_i32_0 : i32, i32
  }
  func.func @transform_3(%arg0: i32) -> (i32, i32, i32) {
    %c0_i32 = arith.constant 0 : i32
    %c0_i32_0 = arith.constant 0 : i32
    %c0_i32_1 = arith.constant 0 : i32
    return %arg0, %c0_i32, %c0_i32_0 : i32, i32, i32
  }
}

module attributes {stable_mosaic.version = 11 : i64} {
  func.func @_dis_conv_kernel(%arg0: i32, %arg1: memref<1x2x3x80xbf16, #tpu.memory_space<vmem>>, %arg2: memref<5x80x16xbf16, #tpu.memory_space<vmem>>, %arg3: memref<1x16xf32, #tpu.memory_space<vmem>>, %arg4: memref<1x1x16xbf16, #tpu.memory_space<vmem>>, %arg5: memref<1x16xf32, #tpu.memory_space<vmem>>) attributes {dimension_semantics = [#tpu.dimension_semantics<parallel>], iteration_bounds = array<i64: 2>, scalar_prefetch = 0 : i64, scratch_operands = 1 : i64, tpu.core_type = #tpu.core_type<tc>, window_params = [{transform_indices = @transform_0, window_bounds = array<i64: 1, 2, 3, 80>}, {pipeline_mode = #tpu.pipeline_mode<synchronous>, transform_indices = @transform_1, window_bounds = array<i64: 5, 80, 16>}, {pipeline_mode = #tpu.pipeline_mode<synchronous>, transform_indices = @transform_2, window_bounds = array<i64: 1, 16>}, {transform_indices = @transform_3, window_bounds = array<i64: 1, 1, 16>}]} {
    %cst = arith.constant 0.000000e+00 : f32
    %0 = vector.broadcast %cst : f32 to vector<1x16xf32>
    %c0 = arith.constant 0 : index
    %c0_0 = arith.constant 0 : index
    %1 = vector.load %arg5[%c0, %c0_0] : memref<1x16xf32, #tpu.memory_space<vmem>>, vector<1x16xf32>
    tpu.vector_store %arg5[%c0, %c0_0], %0 {strides = array<i32>} : memref<1x16xf32, #tpu.memory_space<vmem>>, vector<1x16xf32>,
    %c0_1 = arith.constant 0 : index
    %c0_2 = arith.constant 0 : index
    %c0_3 = arith.constant 0 : index
    %c0_4 = arith.constant 0 : index
    %2 = vector.load %arg1[%c0_1, %c0_2, %c0_3, %c0_4] : memref<1x2x3x80xbf16, #tpu.memory_space<vmem>>, vector<1x1x1x80xbf16>
    %3 = vector.shape_cast %2 : vector<1x1x1x80xbf16> to vector<1x80xbf16>
    %c0_5 = arith.constant 0 : index
    %c0_6 = arith.constant 0 : index
    %4 = vector.load %arg5[%c0_5, %c0_6] : memref<1x16xf32, #tpu.memory_space<vmem>>, vector<1x16xf32>
    %c0_7 = arith.constant 0 : index
    %c0_8 = arith.constant 0 : index
    %c0_9 = arith.constant 0 : index
    %5 = vector.load %arg2[%c0_7, %c0_8, %c0_9] : memref<5x80x16xbf16, #tpu.memory_space<vmem>>, vector<1x80x16xbf16>
    %6 = vector.shape_cast %5 : vector<1x80x16xbf16> to vector<80x16xbf16>
    %cst_10 = arith.constant dense<0.000000e+00> : vector<1x16xf32>
    %7 = tpu.matmul %3, %6, %cst_10 {dimension_numbers = #tpu.dot_dimension_numbers<[1], [0], [0], [1], [0, 0, 1, 1], [], []>} : vector<1x80xbf16>, vector<80x16xbf16>, vector<1x16xf32> -> vector<1x16xf32>
    %8 = arith.addf %4, %7 : vector<1x16xf32>
    %c0_11 = arith.constant 0 : index
    %c0_12 = arith.constant 0 : index
    %9 = vector.load %arg5[%c0_11, %c0_12] : memref<1x16xf32, #tpu.memory_space<vmem>>, vector<1x16xf32>
    tpu.vector_store %arg5[%c0_11, %c0_12], %8 {strides = array<i32>} : memref<1x16xf32, #tpu.memory_space<vmem>>, vector<1x16xf32>,
    %c0_13 = arith.constant 0 : index
    %c1 = arith.constant 1 : index
    %c0_14 = arith.constant 0 : index
    %c0_15 = arith.constant 0 : index
    %10 = vector.load %arg1[%c0_13, %c1, %c0_14, %c0_15] : memref<1x2x3x80xbf16, #tpu.memory_space<vmem>>, vector<1x1x1x80xbf16>
    %11 = vector.shape_cast %10 : vector<1x1x1x80xbf16> to vector<1x80xbf16>
    %c0_16 = arith.constant 0 : index
    %c0_17 = arith.constant 0 : index
    %12 = vector.load %arg5[%c0_16, %c0_17] : memref<1x16xf32, #tpu.memory_space<vmem>>, vector<1x16xf32>
    %c1_18 = arith.constant 1 : index
    %c0_19 = arith.constant 0 : index
    %c0_20 = arith.constant 0 : index
    %13 = vector.load %arg2[%c1_18, %c0_19, %c0_20] : memref<5x80x16xbf16, #tpu.memory_space<vmem>>, vector<1x80x16xbf16>
    %14 = vector.shape_cast %13 : vector<1x80x16xbf16> to vector<80x16xbf16>
    %cst_21 = arith.constant dense<0.000000e+00> : vector<1x16xf32>
    %15 = tpu.matmul %11, %14, %cst_21 {dimension_numbers = #tpu.dot_dimension_numbers<[1], [0], [0], [1], [0, 0, 1, 1], [], []>} : vector<1x80xbf16>, vector<80x16xbf16>, vector<1x16xf32> -> vector<1x16xf32>
    %16 = arith.addf %12, %15 : vector<1x16xf32>
    %c0_22 = arith.constant 0 : index
    %c0_23 = arith.constant 0 : index
    %17 = vector.load %arg5[%c0_22, %c0_23] : memref<1x16xf32, #tpu.memory_space<vmem>>, vector<1x16xf32>
    tpu.vector_store %arg5[%c0_22, %c0_23], %16 {strides = array<i32>} : memref<1x16xf32, #tpu.memory_space<vmem>>, vector<1x16xf32>,
    %c0_24 = arith.constant 0 : index
    %c0_25 = arith.constant 0 : index
    %c1_26 = arith.constant 1 : index
    %c0_27 = arith.constant 0 : index
    %18 = vector.load %arg1[%c0_24, %c0_25, %c1_26, %c0_27] : memref<1x2x3x80xbf16, #tpu.memory_space<vmem>>, vector<1x1x1x80xbf16>
    %19 = vector.shape_cast %18 : vector<1x1x1x80xbf16> to vector<1x80xbf16>
    %c0_28 = arith.constant 0 : index
    %c0_29 = arith.constant 0 : index
    %20 = vector.load %arg5[%c0_28, %c0_29] : memref<1x16xf32, #tpu.memory_space<vmem>>, vector<1x16xf32>
    %c2 = arith.constant 2 : index
    %c0_30 = arith.constant 0 : index
    %c0_31 = arith.constant 0 : index
    %21 = vector.load %arg2[%c2, %c0_30, %c0_31] : memref<5x80x16xbf16, #tpu.memory_space<vmem>>, vector<1x80x16xbf16>
    %22 = vector.shape_cast %21 : vector<1x80x16xbf16> to vector<80x16xbf16>
    %cst_32 = arith.constant dense<0.000000e+00> : vector<1x16xf32>
    %23 = tpu.matmul %19, %22, %cst_32 {dimension_numbers = #tpu.dot_dimension_numbers<[1], [0], [0], [1], [0, 0, 1, 1], [], []>} : vector<1x80xbf16>, vector<80x16xbf16>, vector<1x16xf32> -> vector<1x16xf32>
    %24 = arith.addf %20, %23 : vector<1x16xf32>
    %c0_33 = arith.constant 0 : index
    %c0_34 = arith.constant 0 : index
    %25 = vector.load %arg5[%c0_33, %c0_34] : memref<1x16xf32, #tpu.memory_space<vmem>>, vector<1x16xf32>
    tpu.vector_store %arg5[%c0_33, %c0_34], %24 {strides = array<i32>} : memref<1x16xf32, #tpu.memory_space<vmem>>, vector<1x16xf32>,
    %c0_35 = arith.constant 0 : index
    %c1_36 = arith.constant 1 : index
    %c1_37 = arith.constant 1 : index
    %c0_38 = arith.constant 0 : index
    %26 = vector.load %arg1[%c0_35, %c1_36, %c1_37, %c0_38] : memref<1x2x3x80xbf16, #tpu.memory_space<vmem>>, vector<1x1x1x80xbf16>
    %27 = vector.shape_cast %26 : vector<1x1x1x80xbf16> to vector<1x80xbf16>
    %c0_39 = arith.constant 0 : index
    %c0_40 = arith.constant 0 : index
    %28 = vector.load %arg5[%c0_39, %c0_40] : memref<1x16xf32, #tpu.memory_space<vmem>>, vector<1x16xf32>
    %c3 = arith.constant 3 : index
    %c0_41 = arith.constant 0 : index
    %c0_42 = arith.constant 0 : index
    %29 = vector.load %arg2[%c3, %c0_41, %c0_42] : memref<5x80x16xbf16, #tpu.memory_space<vmem>>, vector<1x80x16xbf16>
    %30 = vector.shape_cast %29 : vector<1x80x16xbf16> to vector<80x16xbf16>
    %cst_43 = arith.constant dense<0.000000e+00> : vector<1x16xf32>
    %31 = tpu.matmul %27, %30, %cst_43 {dimension_numbers = #tpu.dot_dimension_numbers<[1], [0], [0], [1], [0, 0, 1, 1], [], []>} : vector<1x80xbf16>, vector<80x16xbf16>, vector<1x16xf32> -> vector<1x16xf32>
    %32 = arith.addf %28, %31 : vector<1x16xf32>
    %c0_44 = arith.constant 0 : index
    %c0_45 = arith.constant 0 : index
    %33 = vector.load %arg5[%c0_44, %c0_45] : memref<1x16xf32, #tpu.memory_space<vmem>>, vector<1x16xf32>
    tpu.vector_store %arg5[%c0_44, %c0_45], %32 {strides = array<i32>} : memref<1x16xf32, #tpu.memory_space<vmem>>, vector<1x16xf32>,
    %c0_46 = arith.constant 0 : index
    %c0_47 = arith.constant 0 : index
    %c2_48 = arith.constant 2 : index
    %c0_49 = arith.constant 0 : index
    %34 = vector.load %arg1[%c0_46, %c0_47, %c2_48, %c0_49] : memref<1x2x3x80xbf16, #tpu.memory_space<vmem>>, vector<1x1x1x80xbf16>
    %35 = vector.shape_cast %34 : vector<1x1x1x80xbf16> to vector<1x80xbf16>
    %c0_50 = arith.constant 0 : index
    %c0_51 = arith.constant 0 : index
    %36 = vector.load %arg5[%c0_50, %c0_51] : memref<1x16xf32, #tpu.memory_space<vmem>>, vector<1x16xf32>
    %c4 = arith.constant 4 : index
    %c0_52 = arith.constant 0 : index
    %c0_53 = arith.constant 0 : index
    %37 = vector.load %arg2[%c4, %c0_52, %c0_53] : memref<5x80x16xbf16, #tpu.memory_space<vmem>>, vector<1x80x16xbf16>
    %38 = vector.shape_cast %37 : vector<1x80x16xbf16> to vector<80x16xbf16>
    %cst_54 = arith.constant dense<0.000000e+00> : vector<1x16xf32>
    %39 = tpu.matmul %35, %38, %cst_54 {dimension_numbers = #tpu.dot_dimension_numbers<[1], [0], [0], [1], [0, 0, 1, 1], [], []>} : vector<1x80xbf16>, vector<80x16xbf16>, vector<1x16xf32> -> vector<1x16xf32>
    %40 = arith.addf %36, %39 : vector<1x16xf32>
    %c0_55 = arith.constant 0 : index
    %c0_56 = arith.constant 0 : index
    %41 = vector.load %arg5[%c0_55, %c0_56] : memref<1x16xf32, #tpu.memory_space<vmem>>, vector<1x16xf32>
    tpu.vector_store %arg5[%c0_55, %c0_56], %40 {strides = array<i32>} : memref<1x16xf32, #tpu.memory_space<vmem>>, vector<1x16xf32>,
    %c0_57 = arith.constant 0 : index
    %c0_58 = arith.constant 0 : index
    %42 = vector.load %arg5[%c0_57, %c0_58] : memref<1x16xf32, #tpu.memory_space<vmem>>, vector<1x16xf32>
    %c0_59 = arith.constant 0 : index
    %c0_60 = arith.constant 0 : index
    %43 = vector.load %arg3[%c0_59, %c0_60] : memref<1x16xf32, #tpu.memory_space<vmem>>, vector<1x16xf32>
    %44 = arith.addf %42, %43 : vector<1x16xf32>
    %cst_61 = arith.constant 0.000000e+00 : f32
    %45 = vector.broadcast %cst_61 : f32 to vector<1x16xf32>
    %46 = arith.cmpf oge, %44, %45 : vector<1x16xf32>
    %cst_62 = arith.constant 2.000000e-01 : f32
    %47 = vector.broadcast %cst_62 : f32 to vector<1x16xf32>
    %48 = arith.mulf %47, %44 : vector<1x16xf32>
    %49 = arith.select %46, %44, %48 : vector<1x16xi1>, vector<1x16xf32>
    %50 = arith.truncf %49 : vector<1x16xf32> to vector<1x16xbf16>
    %c0_63 = arith.constant 0 : index
    %c0_64 = arith.constant 0 : index
    %c0_65 = arith.constant 0 : index
    %51 = vector.load %arg4[%c0_63, %c0_64, %c0_65] : memref<1x1x16xbf16, #tpu.memory_space<vmem>>, vector<1x1x16xbf16>
    %52 = vector.shape_cast %51 : vector<1x1x16xbf16> to vector<1x16xbf16>
    %53 = vector.shape_cast %50 : vector<1x16xbf16> to vector<1x1x16xbf16>
    tpu.vector_store %arg4[%c0_63, %c0_64, %c0_65], %53 {strides = array<i32>} : memref<1x1x16xbf16, #tpu.memory_space<vmem>>, vector<1x1x16xbf16>,
    return
  }
  func.func @transform_0(%arg0: i32) -> (i32, i32, i32, i32) {
    %c0_i32 = arith.constant 0 : i32
    %c0_i32_0 = arith.constant 0 : i32
    %c0_i32_1 = arith.constant 0 : i32
    %c0_i32_2 = arith.constant 0 : i32
    return %arg0, %c0_i32, %c0_i32_0, %c0_i32_1 : i32, i32, i32, i32
  }
  func.func @transform_1(%arg0: i32) -> (i32, i32, i32) {
    %c0_i32 = arith.constant 0 : i32
    %c0_i32_0 = arith.constant 0 : i32
    %c0_i32_1 = arith.constant 0 : i32
    %c0_i32_2 = arith.constant 0 : i32
    return %c0_i32, %c0_i32_0, %c0_i32_1 : i32, i32, i32
  }
  func.func @transform_2(%arg0: i32) -> (i32, i32) {
    %c0_i32 = arith.constant 0 : i32
    %c0_i32_0 = arith.constant 0 : i32
    %c0_i32_1 = arith.constant 0 : i32
    return %c0_i32, %c0_i32_0 : i32, i32
  }
  func.func @transform_3(%arg0: i32) -> (i32, i32, i32) {
    %c0_i32 = arith.constant 0 : i32
    %c0_i32_0 = arith.constant 0 : i32
    %c0_i32_1 = arith.constant 0 : i32
    return %arg0, %c0_i32, %c0_i32_0 : i32, i32, i32
  }
}

</mosaic_0001>

<bundles_post_ra>
// kernel: dis_conv_module.4
= control target key start
LH: loop header
LB: loop body
LE: loop exit
PB: predicated region body
PF: predicated region fallthrough
CT: control target
= control target key end

     0   :  { %s1326_s12 = smov 0   ;;  %s1499_s0 = inlined_call_operand.vmem [shape: bf16[2,2,80,20], index: 0, kind: input, shape index: {}]   ;;  %s1500_s1 = inlined_call_operand.vmem [shape: bf16[5,20,4], index: 1, kind: input, shape index: {}]   ;;  %s1501_s2 = inlined_call_operand.vmem [shape: f32[1,4], index: 2, kind: input, shape index: {}]   ;;  %s1502_s3 = inlined_call_operand.vmem [shape: bf16[2,64,4], index: 3, kind: output, shape index: {}]  }
   0x1 LB: > { %s1051_s13 = sadd.s32 4294967295, %s1303_s12   ;;  %p1055_p0 = scmp.ge.s32.totalorder %s1303_s12, 1  ;;  %s1303_s12 = sphi %s1326_s12, %s13_s12  }
   0x2   : > { %p137_p1 = scmp.lt.s32.totalorder %s1303_s12, 3 }
   0x4   : > { %p138_p2 = pnand %p1055_p0, %p137_p1 }
   0x5   : > { %p161_p3 = scmp.lt.s32.totalorder (!%p138_p2), %s1051_s13, 1 }
   0x6   : > { %141 = sbr.rel (%p138_p2) target bundleno = 283 (0x11b), region = 32 }
   0xb   : > { %v1267_v0 = vld [vmem:[%s1500_s1 + $0x8] ss:$0 sps:$4 sm:$0x33]   ;;  %vm242_vm0 = vcmask 1041408   ;;  %v1268_v1 = vld [vmem:[%s1500_s1] sm:$0xff]   ;;  %s1504_s13 = smov (!%p161_p3, %s1051_s13), 1 }
   0xc   : > { %1251 = vmatprep.subr.msk.bf16.mxu0 %vm242_vm0, %v1267_v0  ;;  %1252 = vmatprep.subr.msk.bf16.mxu1 %vm242_vm0, %v1267_v0  ;;  %v244_v2 = vsel %vm242_vm0, %v1267_v0, 0  ;;  %v1273_v3 = vld [vmem:[%s1500_s1 + $0x14] ss:$0 sps:$4 sm:$0x33]   ;;  %s1257_s22 = smul.u32 80, %s1504_s13  ;;  %vm229_vm1 = vcmask 162816  }
   0xd   : > { %1188 = vmatpush3.bf16.msra.mxu0 %v244_v2  ;;  %1249 = vmatpush3.bf16.msra.mxu1 %v244_v2  ;;  %v1275_v4 = vld [vmem:[%s1500_s1 + $0x20] ss:$0 sps:$4 sm:$0x33]   ;;  %vm172_vm2 = vcmask 31744   ;;  %v1274_v7 = vld [vmem:[%s1500_s1 + $0xc] sm:$0xff]   ;;  %v1278_v9 = vld [vmem:[%s1500_s1 + $0x18] sm:$0xff]  }
   0xe   : > { %1189 = vmatprep.subr.bf16.mxu0 %v1268_v1  ;;  %1248 = vmatprep.subr.bf16.mxu1 %v1268_v1  ;;  %s1355_s25 = scalar_lea.vmem %s1499_s0, %s1257_s22  ;;  %v535_v8 = vsel %vm242_vm0, %v1275_v4, 0  ;;  %v390_v12 = vsel %vm242_vm0, %v1273_v3, 0  ;;  %v1305_v13 = vmov 0.0   ;;  %v1280_v15 = vld [vmem:[%s1500_s1 + $0x2c] ss:$0 sps:$4 sm:$0x33]  }
   0xf   : > { %v1269_v5 = vld [vmem:[%s1355_s25] sm:$0xff]   ;;  %v1270_v6 = vld [vmem:[%s1355_s25 + $0x10] sm:$0xff]   ;;  %v1271_v10 = vld [vmem:[%s1355_s25 + $0x8] sm:$0xff]   ;;  %175 = vst.msk [vmem:[#allocation2 + $0x10] sm:$0xff] %vm172_vm2, %v1305_v13  ;;  %v680_v21 = vsel %vm242_vm0, %v1280_v15, 0  ;;  %s1148_s15 = sshll.u32 %s1504_s13, 5 }
  0x10   : > { %1191 = vmatprep.mubr.msk.bf16.mxu0 %vm229_vm1, %v1269_v5  ;;  %1195 = vmatprep.mubr.msk.bf16.mxu1 %vm229_vm1, %v1270_v6  ;;  %v1272_v11 = vld [vmem:[%s1355_s25 + $0x18] sm:$0xff]   ;;  %173 = vst.msk [vmem:[#allocation2] sm:$0xff] %vm172_vm2, %v1305_v13  ;;  %174 = vst.msk [vmem:[#allocation2 + $0x8] sm:$0xff] %vm172_vm2, %v1305_v13  ;;  %v1276_v14 = vld [vmem:[%s1355_s25 + $0x28] sm:$0xff]   ;;  %vm987_vm4 = vcmask 27648   ;;  %s1477_s18 = scalar_lea.vmem %s1502_s3, %s1148_s15 }
  0x11   : > { %1190 = vmatpush3.bf16.msra.mxu0 %v1268_v1  ;;  %1250 = vmatpush3.bf16.msra.mxu1 %v1268_v1  ;;  %176 = vst.msk [vmem:[#allocation2 + $0x18] sm:$0xff] %vm172_vm2, %v1305_v13  ;;  %177 = vst.msk [vmem:[#allocation2 + $0x20] sm:$0xff] %vm172_vm2, %v1305_v13  ;;  %v1279_v16 = vld [vmem:[%s1355_s25 + $0x4] sm:$0xff]   ;;  %v1277_v17 = vld [vmem:[%s1355_s25 + $0x30] sm:$0xff]  }
  0x12   : > { %1253 = vmatprep.subr.msk.bf16.mxu1 %vm242_vm0, %v1273_v3  ;;  %1254 = vmatprep.subr.msk.bf16.mxu0 %vm242_vm0, %v1275_v4  ;;  %178 = vst.msk [vmem:[#allocation2 + $0x28] sm:$0xff] %vm172_vm2, %v1305_v13  ;;  %179 = vst.msk [vmem:[#allocation2 + $0x30] sm:$0xff] %vm172_vm2, %v1305_v13  ;;  %v1281_v18 = vld [vmem:[%s1355_s25 + $0xc] sm:$0xff]   ;;  %v1282_v19 = vld [vmem:[%s1355_s25 + $0x38] sm:$0xff]  }
  0x13   : > { %180 = vst.msk [vmem:[#allocation2 + $0x38] sm:$0xff] %vm172_vm2, %v1305_v13  ;;  %v1284_v20 = vld [vmem:[%s1355_s25 + $0x14] sm:$0xff]   ;;  %v1285_v22 = vld [vmem:[%s1500_s1 + $0x24] sm:$0xff]   ;;  %v1286_v27 = vld [vmem:[%s1355_s25 + $0x1c] sm:$0xff]  }
  0x14   : > { %1192 = vmatmul.mubr.msk.bf16.vlgmr.msra.gmra.mxu0 %vm229_vm1, %v1271_v10  ;;  %1196 = vmatmul.mubr.msk.bf16.vlgmr.msra.gmra.mxu1 %vm229_vm1, %v1272_v11  ;;  %v1287_v23 = vld [vmem:[%s1500_s1 + $0x38] ss:$0 sps:$4 sm:$0x33]   ;;  %v1283_v25 = vld [vmem:[%s1355_s25 + $0x40] sm:$0xff]   ;;  %v1290_v26 = vld [vmem:[%s1500_s1 + $0x30] sm:$0xff]  }
  0x15   : > { %1212 = vmatpush3.bf16.msra.mxu0 %v535_v8  ;;  %1200 = vmatpush3.bf16.msra.mxu1 %v390_v12  ;;  %v825_v24 = vsel %vm242_vm0, %v1287_v23, 0  ;;  %v1288_v28 = vld [vmem:[%s1355_s25 + $0x2c] sm:$0xff]   ;;  %v1289_v31 = vld [vmem:[%s1355_s25 + $0x34] sm:$0xff]   ;;  %v1291_v33 = vld [vmem:[%s1355_s25 + $0x3c] sm:$0xff]  }
  0x16   : > { %1203 = vmatprep.mubr.msk.bf16.mxu1 %vm229_vm1, %v1276_v14  ;;  %1201 = vmatprep.subr.bf16.mxu1 %v1274_v7  ;;  %v1293_v29 = vld [vmem:[%s1355_s25 + $0x8] sm:$0xff]   ;;  %v1294_v30 = vld [vmem:[%s1355_s25 + $0x10] sm:$0xff]   ;;  %v1295_v32 = vld [vmem:[%s1355_s25 + $0x18] sm:$0xff]  }
  0x17   : > { %1213 = vmatprep.subr.bf16.mxu0 %v1278_v9  ;;  %1215 = vmatprep.mubr.msk.bf16.mxu0 %vm229_vm1, %v1279_v16  ;;  %v1296_v34 = vld [vmem:[%s1355_s25 + $0x20] sm:$0xff]   ;;  %v191_v36 = vld [vmem:[#allocation2 + $0x10] sm:$0xff]  ;;  %v190_v51 = vld [vmem:[#allocation2 + $0x8] sm:$0xff] }
  0x18   : > { %v1292_v35 = vld [vmem:[%s1355_s25 + $0x44] sm:$0xff]   ;;  %v192_v45 = vld [vmem:[#allocation2 + $0x18] sm:$0xff] }
  0x19   : > { %1214 = vmatpush3.bf16.msra.mxu0 %v1278_v9  ;;  %1202 = vmatpush3.bf16.msra.mxu1 %v1274_v7  ;;  %v195_v37 = vld [vmem:[#allocation2 + $0x30] sm:$0xff]  ;;  %v189_v39 = vld [vmem:[#allocation2] sm:$0xff]  ;;  %v194_v54 = vld [vmem:[#allocation2 + $0x28] sm:$0xff] }
  0x1a   : > { %1255 = vmatprep.subr.msk.bf16.mxu1 %vm242_vm0, %v1280_v15  ;;  %1256 = vmatprep.subr.msk.bf16.mxu0 %vm242_vm0, %v1287_v23  ;;  %v193_v42 = vld [vmem:[#allocation2 + $0x20] sm:$0xff]  ;;  %v196_v48 = vld [vmem:[#allocation2 + $0x38] sm:$0xff] }
  0x1c   : > { %1216 = vmatmul.mubr.msk.bf16.vlgmr.msra.gmra.mxu0 %vm229_vm1, %v1281_v18  ;;  %1204 = vmatmul.mubr.msk.bf16.vlgmr.msra.gmra.mxu1 %vm229_vm1, %v1277_v17 }
  0x1d   : > { %1219 = vmatprep.mubr.msk.bf16.mxu0 %vm229_vm1, %v1284_v20  ;;  %1224 = vmatpush3.bf16.msra.mxu1 %v680_v21 }
  0x1e   : > { %1207 = vmatprep.mubr.msk.bf16.mxu1 %vm229_vm1, %v1282_v19  ;;  %1225 = vmatprep.subr.bf16.mxu1 %v1285_v22 }
  0x1f   : > { %1236 = vmatpush3.bf16.msra.mxu0 %v825_v24 }
  0x20   : > { %1237 = vmatprep.subr.bf16.mxu0 %v1290_v26 }
  0x21   : > { %1226 = vmatpush3.bf16.msra.mxu1 %v1285_v22 }
  0x23   : > { %1238 = vmatpush3.bf16.msra.mxu0 %v1290_v26 }
  0x24   : > { %1220 = vmatmul.mubr.msk.bf16.gmra.mxu0 %vm229_vm1, %v1286_v27  ;;  %1208 = vmatmul.mubr.msk.bf16.gmra.mxu1 %vm229_vm1, %v1283_v25 }
  0x25   : > { %1227 = vmatprep.mubr.msk.bf16.mxu1 %vm229_vm1, %v1288_v28  ;;  %1239 = vmatprep.mubr.msk.bf16.mxu0 %vm229_vm1, %v1293_v29 }
  0x2c   : > { %1240 = vmatmul.mubr.msk.bf16.vlgmr.msra.gmra.mxu0 %vm229_vm1, %v1294_v30  ;;  %1228 = vmatmul.mubr.msk.bf16.vlgmr.msra.gmra.mxu1 %vm229_vm1, %v1289_v31 }
  0x2d   : > { %1243 = vmatprep.mubr.msk.bf16.mxu0 %vm229_vm1, %v1295_v32  ;;  %1231 = vmatprep.mubr.msk.bf16.mxu1 %vm229_vm1, %v1291_v33 }
  0x34   : > { %1244 = vmatmul.mubr.msk.bf16.gmra.mxu0 %vm229_vm1, %v1296_v34  ;;  %1232 = vmatmul.mubr.msk.bf16.gmra.mxu1 %vm229_vm1, %v1292_v35 }
  0xd4   : > { %v1193_v38 = vpop.f32.mrf.mxu0  ;;  %v1197_v41 = vpop.f32.mrf.mxu1 }
  0xd5   : > { %v313_v40 = vadd.f32 %v1193_v38, %v191_v36  ;;  %v317_v43 = vadd.f32 %v1197_v41, %v195_v37 }
  0xd6   : > { %v280_v44 = vpop.f32.mrf.mxu0  ;;  %v296_v47 = vpop.f32.mrf.mxu1 }
  0xd7   : > { %321 = vst.msk [vmem:[#allocation2 + $0x10] sm:$0xff] %vm172_vm2, %v313_v40  ;;  %v311_v46 = vadd.f32 %v280_v44, %v189_v39  ;;  %325 = vst.msk [vmem:[#allocation2 + $0x30] sm:$0xff] %vm172_vm2, %v317_v43  ;;  %v315_v49 = vadd.f32 %v296_v47, %v193_v42 }
  0xd8   : > { %v1194_v50 = vpop.f32.mrf.mxu0  ;;  %v1198_v53 = vpop.f32.mrf.mxu1 }
  0xd9   : > { %319 = vst.msk [vmem:[#allocation2] sm:$0xff] %vm172_vm2, %v311_v46  ;;  %v314_v52 = vadd.f32 %v1194_v50, %v192_v45  ;;  %323 = vst.msk [vmem:[#allocation2 + $0x20] sm:$0xff] %vm172_vm2, %v315_v49  ;;  %v318_v55 = vadd.f32 %v1198_v53, %v196_v48 }
  0xda   : > { %v283_v56 = vpop.f32.mrf.mxu0  ;;  %v299_v58 = vpop.f32.mrf.mxu1 }
  0xdb   : > { %322 = vst.msk [vmem:[#allocation2 + $0x18] sm:$0xff] %vm172_vm2, %v314_v52  ;;  %v312_v57 = vadd.f32 %v283_v56, %v190_v51  ;;  %326 = vst.msk [vmem:[#allocation2 + $0x38] sm:$0xff] %vm172_vm2, %v318_v55  ;;  %v316_v59 = vadd.f32 %v299_v58, %v194_v54 }
  0xdc   : > { %v1217_v60 = vpop.f32.mrf.mxu0  ;;  %v1205_v61 = vpop.f32.mrf.mxu1 }
  0xdd   : > { %320 = vst.msk [vmem:[#allocation2 + $0x8] sm:$0xff] %vm172_vm2, %v312_v57  ;;  %324 = vst.msk [vmem:[#allocation2 + $0x28] sm:$0xff] %vm172_vm2, %v316_v59 }
  0xde   : > { %v338_v62 = vld [vmem:[#allocation2 + $0x10] sm:$0xff]  ;;  %v571_v63 = vpop.f32.mrf.mxu0  ;;  %v426_v1 = vpop.f32.mrf.mxu1 }
  0xdf   : > { %v459_v0 = vadd.f32 %v1205_v61, %v338_v62  ;;  %v342_v13 = vld [vmem:[#allocation2 + $0x30] sm:$0xff] }
  0xe0   : > { %v336_v2 = vld [vmem:[#allocation2] sm:$0xff]  ;;  %v1218_v3 = vpop.f32.mrf.mxu0  ;;  %v1206_v5 = vpop.f32.mrf.mxu1 }
  0xe1   : > { %467 = vst.msk [vmem:[#allocation2 + $0x10] sm:$0xff] %vm172_vm2, %v459_v0  ;;  %v457_v4 = vadd.f32 %v426_v1, %v336_v2  ;;  %v340_v17 = vld [vmem:[#allocation2 + $0x20] sm:$0xff] }
  0xe2   : > { %v339_v6 = vld [vmem:[#allocation2 + $0x18] sm:$0xff]  ;;  %v574_v7 = vpop.f32.mrf.mxu0  ;;  %v429_v9 = vpop.f32.mrf.mxu1 }
  0xe3   : > { %465 = vst.msk [vmem:[#allocation2] sm:$0xff] %vm172_vm2, %v457_v4  ;;  %v460_v8 = vadd.f32 %v1206_v5, %v339_v6  ;;  %v343_v23 = vld [vmem:[#allocation2 + $0x38] sm:$0xff] }
  0xe4   : > { %v337_v10 = vld [vmem:[#allocation2 + $0x8] sm:$0xff]  ;;  %v1221_v11 = vpop.f32.mrf.mxu0  ;;  %v1209_v14 = vpop.f32.mrf.mxu1 }
  0xe5   : > { %468 = vst.msk [vmem:[#allocation2 + $0x18] sm:$0xff] %vm172_vm2, %v460_v8  ;;  %v458_v12 = vadd.f32 %v429_v9, %v337_v10  ;;  %v463_v15 = vadd.f32 %v1209_v14, %v342_v13  ;;  %v341_v28 = vld [vmem:[#allocation2 + $0x28] sm:$0xff] }
  0xe6   : > { %v587_v16 = vpop.f32.mrf.mxu0  ;;  %v442_v18 = vpop.f32.mrf.mxu1 }
  0xe7   : > { %466 = vst.msk [vmem:[#allocation2 + $0x8] sm:$0xff] %vm172_vm2, %v458_v12  ;;  %471 = vst.msk [vmem:[#allocation2 + $0x30] sm:$0xff] %vm172_vm2, %v463_v15  ;;  %v461_v20 = vadd.f32 %v442_v18, %v340_v17 }
  0xe8   : > { %v483_v19 = vld [vmem:[#allocation2 + $0x10] sm:$0xff]  ;;  %v1222_v21 = vpop.f32.mrf.mxu0  ;;  %v1210_v24 = vpop.f32.mrf.mxu1 }
  0xe9   : > { %v604_v22 = vadd.f32 %v1217_v60, %v483_v19  ;;  %469 = vst.msk [vmem:[#allocation2 + $0x20] sm:$0xff] %vm172_vm2, %v461_v20  ;;  %v464_v26 = vadd.f32 %v1210_v24, %v343_v23  ;;  %v1137_v19 = vld [vmem:[%s1501_s2] ss:$0 sm:$0xff] }
  0xea   : > { %v481_v25 = vld [vmem:[#allocation2] sm:$0xff]  ;;  %v445_v29 = vpop.f32.mrf.mxu1  ;;  %v590_v30 = vpop.f32.mrf.mxu0 }
  0xeb   : > { %612 = vst.msk [vmem:[#allocation2 + $0x10] sm:$0xff] %vm172_vm2, %v604_v22  ;;  %v602_v27 = vadd.f32 %v571_v63, %v481_v25  ;;  %472 = vst.msk [vmem:[#allocation2 + $0x38] sm:$0xff] %vm172_vm2, %v464_v26  ;;  %v462_v32 = vadd.f32 %v445_v29, %v341_v28 }
  0xec   : > { %v484_v31 = vld [vmem:[#allocation2 + $0x18] sm:$0xff]  ;;  %v1229_v34 = vpop.f32.mrf.mxu1  ;;  %v1241_v35 = vpop.f32.mrf.mxu0 }
  0xed   : > { %610 = vst.msk [vmem:[#allocation2] sm:$0xff] %vm172_vm2, %v602_v27  ;;  %v605_v33 = vadd.f32 %v1218_v3, %v484_v31  ;;  %470 = vst.msk [vmem:[#allocation2 + $0x28] sm:$0xff] %vm172_vm2, %v462_v32 }
  0xee   : > { %v482_v36 = vld [vmem:[#allocation2 + $0x8] sm:$0xff]  ;;  %v487_v38 = vld [vmem:[#allocation2 + $0x30] sm:$0xff]  ;;  %v716_v39 = vpop.f32.mrf.mxu1  ;;  %v861_v43 = vpop.f32.mrf.mxu0 }
  0xef   : > { %613 = vst.msk [vmem:[#allocation2 + $0x18] sm:$0xff] %vm172_vm2, %v605_v33  ;;  %v603_v37 = vadd.f32 %v574_v7, %v482_v36  ;;  %v608_v40 = vadd.f32 %v1221_v11, %v487_v38 }
  0xf0   : > { %v485_v41 = vld [vmem:[#allocation2 + $0x20] sm:$0xff]  ;;  %v1230_v42 = vpop.f32.mrf.mxu1  ;;  %v1242_v54 = vpop.f32.mrf.mxu0 }
  0xf1   : > { %611 = vst.msk [vmem:[#allocation2 + $0x8] sm:$0xff] %vm172_vm2, %v603_v37  ;;  %616 = vst.msk [vmem:[#allocation2 + $0x30] sm:$0xff] %vm172_vm2, %v608_v40  ;;  %v606_v44 = vadd.f32 %v587_v16, %v485_v41 }
  0xf2   : > { %v628_v45 = vld [vmem:[#allocation2 + $0x10] sm:$0xff]  ;;  %v488_v47 = vld [vmem:[#allocation2 + $0x38] sm:$0xff]  ;;  %v719_v48 = vpop.f32.mrf.mxu1  ;;  %v864_v62 = vpop.f32.mrf.mxu0 }
  0xf3   : > { %v749_v46 = vadd.f32 %v1229_v34, %v628_v45  ;;  %614 = vst.msk [vmem:[#allocation2 + $0x20] sm:$0xff] %vm172_vm2, %v606_v44  ;;  %v609_v49 = vadd.f32 %v1222_v21, %v488_v47 }
  0xf4   : > { %v626_v50 = vld [vmem:[#allocation2] sm:$0xff]  ;;  %v486_v52 = vld [vmem:[#allocation2 + $0x28] sm:$0xff]  ;;  %v1233_v53 = vpop.f32.mrf.mxu1  ;;  %v1245_v6 = vpop.f32.mrf.mxu0 }
  0xf5   : > { %757 = vst.msk [vmem:[#allocation2 + $0x10] sm:$0xff] %vm172_vm2, %v749_v46  ;;  %v747_v51 = vadd.f32 %v716_v39, %v626_v50  ;;  %617 = vst.msk [vmem:[#allocation2 + $0x38] sm:$0xff] %vm172_vm2, %v609_v49  ;;  %v607_v55 = vadd.f32 %v590_v30, %v486_v52 }
  0xf6   : > { %v629_v56 = vld [vmem:[#allocation2 + $0x18] sm:$0xff]  ;;  %v732_v58 = vpop.f32.mrf.mxu1  ;;  %v877_v15 = vpop.f32.mrf.mxu0 }
  0xf7   : > { %755 = vst.msk [vmem:[#allocation2] sm:$0xff] %vm172_vm2, %v747_v51  ;;  %v750_v57 = vadd.f32 %v1230_v42, %v629_v56  ;;  %615 = vst.msk [vmem:[#allocation2 + $0x28] sm:$0xff] %vm172_vm2, %v607_v55 }
  0xf8   : > { %v627_v59 = vld [vmem:[#allocation2 + $0x8] sm:$0xff]  ;;  %v632_v61 = vld [vmem:[#allocation2 + $0x30] sm:$0xff]  ;;  %v1234_v1 = vpop.f32.mrf.mxu1  ;;  %v1246_v22 = vpop.f32.mrf.mxu0 }
  0xf9   : > { %758 = vst.msk [vmem:[#allocation2 + $0x18] sm:$0xff] %vm172_vm2, %v750_v57  ;;  %v748_v60 = vadd.f32 %v719_v48, %v627_v59  ;;  %v753_v63 = vadd.f32 %v1233_v53, %v632_v61 }
  0xfa   : > { %v630_v0 = vld [vmem:[#allocation2 + $0x20] sm:$0xff]  ;;  %v735_v11 = vpop.f32.mrf.mxu1  ;;  %v880_v32 = vpop.f32.mrf.mxu0 }
  0xfb   : > { %756 = vst.msk [vmem:[#allocation2 + $0x8] sm:$0xff] %vm172_vm2, %v748_v60  ;;  %761 = vst.msk [vmem:[#allocation2 + $0x30] sm:$0xff] %vm172_vm2, %v753_v63  ;;  %v751_v3 = vadd.f32 %v732_v58, %v630_v0 }
  0xfc   : > { %v773_v2 = vld [vmem:[#allocation2 + $0x10] sm:$0xff]  ;;  %v633_v5 = vld [vmem:[#allocation2 + $0x38] sm:$0xff] }
  0xfd   : > { %v894_v4 = vadd.f32 %v1241_v35, %v773_v2  ;;  %759 = vst.msk [vmem:[#allocation2 + $0x20] sm:$0xff] %vm172_vm2, %v751_v3  ;;  %v754_v8 = vadd.f32 %v1234_v1, %v633_v5 }
  0xfe   : > { %v771_v7 = vld [vmem:[#allocation2] sm:$0xff]  ;;  %v631_v10 = vld [vmem:[#allocation2 + $0x28] sm:$0xff] }
  0xff   : > { %902 = vst.msk [vmem:[#allocation2 + $0x10] sm:$0xff] %vm172_vm2, %v894_v4  ;;  %v892_v9 = vadd.f32 %v861_v43, %v771_v7  ;;  %762 = vst.msk [vmem:[#allocation2 + $0x38] sm:$0xff] %vm172_vm2, %v754_v8  ;;  %v752_v13 = vadd.f32 %v735_v11, %v631_v10 }
 0x100   : > { %v774_v12 = vld [vmem:[#allocation2 + $0x18] sm:$0xff] }
 0x101   : > { %900 = vst.msk [vmem:[#allocation2] sm:$0xff] %vm172_vm2, %v892_v9  ;;  %v895_v14 = vadd.f32 %v1242_v54, %v774_v12  ;;  %760 = vst.msk [vmem:[#allocation2 + $0x28] sm:$0xff] %vm172_vm2, %v752_v13 }
 0x102   : > { %v772_v16 = vld [vmem:[#allocation2 + $0x8] sm:$0xff]  ;;  %v777_v18 = vld [vmem:[#allocation2 + $0x30] sm:$0xff] }
 0x103   : > { %903 = vst.msk [vmem:[#allocation2 + $0x18] sm:$0xff] %vm172_vm2, %v895_v14  ;;  %v893_v17 = vadd.f32 %v864_v62, %v772_v16  ;;  %v898_v20 = vadd.f32 %v1245_v6, %v777_v18 }
 0x104   : > { %v775_v21 = vld [vmem:[#allocation2 + $0x20] sm:$0xff] }
 0x105   : > { %901 = vst.msk [vmem:[#allocation2 + $0x8] sm:$0xff] %vm172_vm2, %v893_v17  ;;  %906 = vst.msk [vmem:[#allocation2 + $0x30] sm:$0xff] %vm172_vm2, %v898_v20  ;;  %v896_v24 = vadd.f32 %v877_v15, %v775_v21 }
 0x106   : > { %v910_v23 = vld [vmem:[#allocation2 + $0x10] sm:$0xff]  ;;  %v778_v26 = vld [vmem:[#allocation2 + $0x38] sm:$0xff] }
 0x107   : > { %v925_v25 = vadd.f32 %v1137_v19, %v910_v23  ;;  %904 = vst.msk [vmem:[#allocation2 + $0x20] sm:$0xff] %vm172_vm2, %v896_v24  ;;  %v899_v28 = vadd.f32 %v1246_v22, %v778_v26 }
 0x108   : > { %v908_v27 = vld [vmem:[#allocation2] sm:$0xff]  ;;  %v776_v31 = vld [vmem:[#allocation2 + $0x28] sm:$0xff] }
 0x109   : > { %vm933_vm3 = vcmp.ge.f32.partialorder %v925_v25, 0.0  ;;  %v941_v29 = vmul.f32 0.2, %v925_v25  ;;  %v923_v30 = vadd.f32 %v1137_v19, %v908_v27  ;;  %907 = vst.msk [vmem:[#allocation2 + $0x38] sm:$0xff] %vm172_vm2, %v899_v28  ;;  %v897_v34 = vadd.f32 %v880_v32, %v776_v31 }
 0x10a   : > { %v911_v33 = vld [vmem:[#allocation2 + $0x18] sm:$0xff] }
 0x10b   : > { %v949_v35 = vsel %vm933_vm3, %v925_v25, %v941_v29  ;;  %vm931_vm5 = vcmp.ge.f32.partialorder %v923_v30, 0.0  ;;  %v939_v36 = vmul.f32 0.2, %v923_v30  ;;  %v926_v37 = vadd.f32 %v1137_v19, %v911_v33  ;;  %905 = vst.msk [vmem:[#allocation2 + $0x28] sm:$0xff] %vm172_vm2, %v897_v34 }
 0x10c   : > { %v1151_v38 = vpack.c.bf16 %v949_v35, %v949_v35  ;;  %v909_v39 = vld [vmem:[#allocation2 + $0x8] sm:$0xff]  ;;  %v914_v43 = vld [vmem:[#allocation2 + $0x30] sm:$0xff] }
 0x10d   : > { %v947_v40 = vsel %vm931_vm5, %v923_v30, %v939_v36  ;;  %vm934_vm6 = vcmp.ge.f32.partialorder %v926_v37, 0.0  ;;  %v942_v41 = vmul.f32 0.2, %v926_v37  ;;  %v924_v42 = vadd.f32 %v1137_v19, %v909_v39 }
 0x10e   : > { %990 = vst.msk [vmem:[%s1477_s18 + $0x8] sm:$0xf] %vm987_vm4, %v1151_v38  ;;  %v1149_v44 = vpack.c.bf16 %v947_v40, %v947_v40  ;;  %v929_v45 = vadd.f32 %v1137_v19, %v914_v43  ;;  %v912_v48 = vld [vmem:[#allocation2 + $0x20] sm:$0xff] }
 0x10f   : > { %v950_v46 = vsel %vm934_vm6, %v926_v37, %v942_v41  ;;  %vm932_vm7 = vcmp.ge.f32.partialorder %v924_v42, 0.0  ;;  %v940_v47 = vmul.f32 0.2, %v924_v42  ;;  %v927_v51 = vadd.f32 %v1137_v19, %v912_v48 }
 0x110   : > { %988 = vst.msk [vmem:[%s1477_s18] sm:$0xf] %vm987_vm4, %v1149_v44  ;;  %v1152_v49 = vpack.c.bf16 %v950_v46, %v950_v46  ;;  %vm937_vm8 = vcmp.ge.f32.partialorder %v929_v45, 0.0  ;;  %v945_v50 = vmul.f32 0.2, %v929_v45  ;;  %v915_v53 = vld [vmem:[#allocation2 + $0x38] sm:$0xff] }
 0x111   : > { %v948_v52 = vsel %vm932_vm7, %v924_v42, %v940_v47  ;;  %vm935_vm9 = vcmp.ge.f32.partialorder %v927_v51, 0.0  ;;  %v943_v56 = vmul.f32 0.2, %v927_v51  ;;  %v930_v58 = vadd.f32 %v1137_v19, %v915_v53 }
 0x112   : > { %991 = vst.msk [vmem:[%s1477_s18 + $0xc] sm:$0xf] %vm987_vm4, %v1152_v49  ;;  %v1150_v54 = vpack.c.bf16 %v948_v52, %v948_v52  ;;  %v953_v55 = vsel %vm937_vm8, %v929_v45, %v945_v50  ;;  %v913_v59 = vld [vmem:[#allocation2 + $0x28] sm:$0xff] }
 0x113   : > { %v1155_v57 = vpack.c.bf16 %v953_v55, %v953_v55  ;;  %v951_v60 = vsel %vm935_vm9, %v927_v51, %v943_v56  ;;  %v928_v61 = vadd.f32 %v1137_v19, %v913_v59  ;;  %vm938_vm10 = vcmp.ge.f32.partialorder %v930_v58, 0.0 }
 0x114   : > { %989 = vst.msk [vmem:[%s1477_s18 + $0x4] sm:$0xf] %vm987_vm4, %v1150_v54  ;;  %v1153_v62 = vpack.c.bf16 %v951_v60, %v951_v60  ;;  %v946_v63 = vmul.f32 0.2, %v930_v58 }
 0x115   : > { %994 = vst.msk [vmem:[%s1477_s18 + $0x18] sm:$0xf] %vm987_vm4, %v1155_v57  ;;  %vm936_vm11 = vcmp.ge.f32.partialorder %v928_v61, 0.0  ;;  %v944_v0 = vmul.f32 0.2, %v928_v61 }
 0x116   : > { %992 = vst.msk [vmem:[%s1477_s18 + $0x10] sm:$0xf] %vm987_vm4, %v1153_v62  ;;  %v954_v1 = vsel %vm938_vm10, %v930_v58, %v946_v63 }
 0x117   : > { %v1156_v2 = vpack.c.bf16 %v954_v1, %v954_v1  ;;  %v952_v3 = vsel %vm936_vm11, %v928_v61, %v944_v0 }
 0x118   : > { %v1154_v4 = vpack.c.bf16 %v952_v3, %v952_v3 }
 0x119   : > { %995 = vst.msk [vmem:[%s1477_s18 + $0x1c] sm:$0xf] %vm987_vm4, %v1156_v2 }
 0x11a   : > { %993 = vst.msk [vmem:[%s1477_s18 + $0x14] sm:$0xf] %vm987_vm4, %v1154_v4 }
 0x11b PF: > { %s13_s12 = sadd.s32 1, %s1303_s12  }
 0x11c   : > { %p10_p4 = scmp.ge.s32.totalorder %s13_s12, 4  }
 0x11e   :  { %12 = sbr.rel (!%p10_p4) target bundleno = 1 (0x1), region = 67 }

// kernel: dis_conv_module.5
= control target key start
LH: loop header
LB: loop body
LE: loop exit
PB: predicated region body
PF: predicated region fallthrough
CT: control target
= control target key end

     0   :  { %s808_s12 = smov 0   ;;  %s917_s0 = inlined_call_operand.vmem [shape: bf16[2,2,24,20], index: 0, kind: input, shape index: {}]   ;;  %s918_s1 = inlined_call_operand.vmem [shape: bf16[5,20,8], index: 1, kind: input, shape index: {}]   ;;  %s919_s2 = inlined_call_operand.vmem [shape: f32[1,8], index: 2, kind: input, shape index: {}]   ;;  %s920_s3 = inlined_call_operand.vmem [shape: bf16[2,16,8], index: 3, kind: output, shape index: {}]  }
   0x1 LB: > { %s640_s13 = sadd.s32 4294967295, %s784_s12   ;;  %p644_p0 = scmp.ge.s32.totalorder %s784_s12, 1  ;;  %s784_s12 = sphi %s808_s12, %s13_s12  }
   0x2   : > { %p137_p1 = scmp.lt.s32.totalorder %s784_s12, 3 }
   0x4   : > { %p138_p2 = pnand %p644_p0, %p137_p1 }
   0x5   : > { %p161_p3 = scmp.lt.s32.totalorder (!%p138_p2), %s640_s13, 1 }
   0x6   : > { %141 = sbr.rel (%p138_p2) target bundleno = 275 (0x113), region = 32 }
   0xb   : > { %v761_v0 = vld [vmem:[%s918_s1 + $0x8] ss:$0 sps:$4 sm:$0x33]   ;;  %v786_v1 = vmov 0.0   ;;  %vm200_vm0 = vcmask 1041408   ;;  %v762_v4 = vld [vmem:[%s918_s1] sm:$0xff]  }
   0xc   : > { %710 = vmatprep.subr.bf16.mxu0 %v786_v1  ;;  %718 = vmatprep.subr.bf16.mxu1 %v786_v1  ;;  %v202_v2 = vsel %vm200_vm0, %v761_v0, 0  ;;  %v763_v3 = vld [vmem:[%s918_s1 + $0x14] ss:$0 sps:$4 sm:$0x33]   ;;  %vm787_vm1 = vmmov 0   ;;  %v765_v6 = vld [vmem:[%s918_s1 + $0xc] sm:$0xff]  }
   0xd   : > { %711 = vmatpush3.bf16.msra.mxu0 %v202_v2  ;;  %v276_v5 = vsel %vm200_vm0, %v763_v3, 0  ;;  %714 = vmatprep.mubr.msk.bf16.mxu0 %vm787_vm1, %v786_v1  ;;  %s922_s13 = smov (!%p161_p3, %s640_s13), 1  ;;  %v767_v7 = vld [vmem:[%s918_s1 + $0x20] ss:$0 sps:$4 sm:$0x33]   ;;  %vm196_vm2 = vcmask 162816  }
   0xe   : > { %712 = vmatprep.subr.bf16.mxu0 %v786_v1  ;;  %719 = vmatpush3.bf16.msra.mxu1 %v276_v5  ;;  %s750_s24 = smul.u32 24, %s922_s13  ;;  %v771_v8 = vld [vmem:[%s918_s1 + $0x2c] ss:$0 sps:$4 sm:$0x33]   ;;  %v357_v9 = vsel %vm200_vm0, %v767_v7, 0  ;;  %vm340_vm3 = vcmask 1045504  }
   0xf   : > { %722 = vmatprep.mubr.msk.bf16.mxu1 %vm787_vm1, %v786_v1  ;;  %720 = vmatprep.subr.bf16.mxu1 %v786_v1  ;;  %vm172_vm4 = vcmask 64512   ;;  %v768_v12 = vld [vmem:[%s918_s1 + $0x18] sm:$0xff]   ;;  %v437_v13 = vsel %vm200_vm0, %v771_v8, 0  ;;  %v772_v17 = vld [vmem:[%s918_s1 + $0x24] sm:$0xff]   ;;  %v776_v27 = vld [vmem:[%s918_s1 + $0x30] sm:$0xff]   ;;  %s692_s15 = sshll.u32 %s922_s13, 3 }
  0x10   : > { %s851_s29 = scalar_lea.vmem %s917_s0, %s750_s24  ;;  %173 = vst.msk [vmem:[#allocation2] sm:$0xff] %vm172_vm4, %v786_v1  ;;  %174 = vst.msk [vmem:[#allocation2 + $0x8] sm:$0xff] %vm172_vm4, %v786_v1  ;;  %v775_v14 = vld [vmem:[%s918_s1 + $0x38] ss:$0 sps:$4 sm:$0x33]   ;;  %s170_s18 = scalar_lea.vmem %s920_s3, %s692_s15  ;;  %vm582_vm6 = vcmask 60416  }
  0x11   : > { %713 = vmatpush3.bf16.msra.mxu0 %v762_v4  ;;  %v764_v10 = vld [vmem:[%s851_s29] sm:$0xff]   ;;  %v766_v11 = vld [vmem:[%s851_s29 + $0xc] sm:$0xff]   ;;  %v770_v16 = vld [vmem:[%s851_s29 + $0x8] ss:$0 sps:$4 sm:$0x33]   ;;  %v510_v25 = vsel %vm200_vm0, %v775_v14, 0 }
  0x12   : > { %726 = vmatprep.subr.bf16.mxu0 %v786_v1  ;;  %721 = vmatpush3.bf16.msra.mxu1 %v765_v6  ;;  %v769_v15 = vld [vmem:[%s851_s29] sm:$0xfc]   ;;  %v342_v19 = vrot.slane %v770_v16, 2  ;;  %v773_v20 = vld [vmem:[%s851_s29 + $0xc] sm:$0xfc]  }
  0x13   : > { %734 = vmatprep.subr.bf16.mxu1 %v786_v1  ;;  %v341_v18 = vrot.slane %v769_v15, 2  ;;  %v774_v21 = vld [vmem:[%s851_s29 + $0x14] ss:$0 sps:$4 sm:$0x33]   ;;  %v421_v23 = vrot.slane %v773_v20, 2  ;;  %v777_v28 = vld [vmem:[%s851_s29 + $0x4] sm:$0xff]  }
  0x14   : > { %715 = vmatmul.mubr.msk.bf16.vlgmr.msra.gmra.mxu0 %vm196_vm2, %v764_v10  ;;  %v422_v24 = vrot.slane %v774_v21, 2  ;;  %v687_v5 = vld [vmem:[%s919_s2] ss:$0 sm:$0xff] }
  0x15   : > { %723 = vmatmul.mubr.msk.bf16.vlgmr.msra.gmra.mxu1 %vm196_vm2, %v766_v11  ;;  %727 = vmatpush3.bf16.msra.mxu0 %v357_v9  ;;  %v343_v22 = vsel %vm340_vm3, %v341_v18, %v342_v19 }
  0x16   : > { %728 = vmatprep.subr.bf16.mxu0 %v786_v1  ;;  %730 = vmatprep.mubr.msk.bf16.mxu0 %vm787_vm1, %v786_v1  ;;  %v423_v26 = vsel %vm340_vm3, %v421_v23, %v422_v24 }
  0x17   : > { %735 = vmatpush3.bf16.msra.mxu1 %v437_v13  ;;  %738 = vmatprep.mubr.msk.bf16.mxu1 %vm787_vm1, %v786_v1  ;;  %v177_v29 = vld [vmem:[#allocation2] sm:$0xff]  ;;  %v178_v34 = vld [vmem:[#allocation2 + $0x8] sm:$0xff] }
  0x18   : > { %736 = vmatprep.subr.bf16.mxu1 %v786_v1 }
  0x19   : > { %729 = vmatpush3.bf16.msra.mxu0 %v768_v12 }
  0x1a   : > { %742 = vmatprep.subr.bf16.mxu0 %v786_v1 }
  0x1b   : > { %737 = vmatpush3.bf16.msra.mxu1 %v772_v17 }
  0x1c   : > { %731 = vmatmul.mubr.msk.bf16.vlgmr.msra.gmra.mxu0 %vm196_vm2, %v343_v22 }
  0x1d   : > { %743 = vmatpush3.bf16.msra.mxu0 %v510_v25  ;;  %746 = vmatprep.mubr.msk.bf16.mxu0 %vm787_vm1, %v786_v1 }
  0x1e   : > { %739 = vmatmul.mubr.msk.bf16.vlgmr.msra.gmra.mxu1 %vm196_vm2, %v423_v26  ;;  %744 = vmatprep.subr.bf16.mxu0 %v786_v1 }
  0x21   : > { %745 = vmatpush3.bf16.msra.mxu0 %v776_v27 }
  0x24   : > { %747 = vmatmul.mubr.msk.bf16.vlgmr.msra.gmra.mxu0 %vm196_vm2, %v777_v28 }
  0xd4   : > { %v238_v30 = vpop.f32.mrf.mxu0 }
  0xd5   : > { %v245_v31 = vadd.f32 %v238_v30, %v177_v29  ;;  %v312_v32 = vpop.f32.mrf.mxu1 }
  0xd6   : > { %v716_v33 = vpop.f32.mrf.mxu0 }
  0xd7   : > { %247 = vst.msk [vmem:[#allocation2] sm:$0xff] %vm172_vm4, %v245_v31  ;;  %v724_v35 = vpop.f32.mrf.mxu1 }
  0xd8   : > { %v241_v36 = vpop.f32.mrf.mxu0 }
  0xd9   : > { %v246_v37 = vadd.f32 %v241_v36, %v178_v34  ;;  %v315_v38 = vpop.f32.mrf.mxu1 }
  0xda   : > { %v717_v39 = vpop.f32.mrf.mxu0 }
  0xdb   : > { %248 = vst.msk [vmem:[#allocation2 + $0x8] sm:$0xff] %vm172_vm4, %v246_v37  ;;  %v725_v40 = vpop.f32.mrf.mxu1 }
  0xdc   : > { %v393_v41 = vpop.f32.mrf.mxu0 }
  0xde   : > { %v252_v42 = vld [vmem:[#allocation2] sm:$0xff]  ;;  %v732_v43 = vpop.f32.mrf.mxu0  ;;  %v473_v44 = vpop.f32.mrf.mxu1 }
  0xdf   : > { %v319_v45 = vadd.f32 %v312_v32, %v252_v42 }
  0xe0   : > { %v396_v46 = vpop.f32.mrf.mxu0  ;;  %v740_v47 = vpop.f32.mrf.mxu1 }
  0xe1   : > { %321 = vst.msk [vmem:[#allocation2] sm:$0xff] %vm172_vm4, %v319_v45 }
  0xe2   : > { %v253_v48 = vld [vmem:[#allocation2 + $0x8] sm:$0xff]  ;;  %v733_v49 = vpop.f32.mrf.mxu0  ;;  %v476_v50 = vpop.f32.mrf.mxu1 }
  0xe3   : > { %v320_v51 = vadd.f32 %v315_v38, %v253_v48 }
  0xe4   : > { %v741_v52 = vpop.f32.mrf.mxu1  ;;  %v546_v53 = vpop.f32.mrf.mxu0 }
  0xe5   : > { %322 = vst.msk [vmem:[#allocation2 + $0x8] sm:$0xff] %vm172_vm4, %v320_v51 }
  0xe6   : > { %v748_v54 = vpop.f32.mrf.mxu0 }
  0xe8   : > { %v326_v55 = vld [vmem:[#allocation2] sm:$0xff]  ;;  %v549_v56 = vpop.f32.mrf.mxu0 }
  0xe9   : > { %v400_v57 = vadd.f32 %v393_v41, %v326_v55 }
  0xea   : > { %v749_v58 = vpop.f32.mrf.mxu0 }
  0xeb   : > { %402 = vst.msk [vmem:[#allocation2] sm:$0xff] %vm172_vm4, %v400_v57 }
  0xec   : > { %v327_v59 = vld [vmem:[#allocation2 + $0x8] sm:$0xff] }
  0xed   : > { %v401_v60 = vadd.f32 %v396_v46, %v327_v59 }
  0xef   : > { %403 = vst.msk [vmem:[#allocation2 + $0x8] sm:$0xff] %vm172_vm4, %v401_v60 }
  0xf2   : > { %v407_v61 = vld [vmem:[#allocation2] sm:$0xff] }
  0xf3   : > { %v480_v62 = vadd.f32 %v473_v44, %v407_v61 }
  0xf5   : > { %482 = vst.msk [vmem:[#allocation2] sm:$0xff] %vm172_vm4, %v480_v62 }
  0xf6   : > { %v408_v63 = vld [vmem:[#allocation2 + $0x8] sm:$0xff] }
  0xf7   : > { %v481_v0 = vadd.f32 %v476_v50, %v408_v63 }
  0xf9   : > { %483 = vst.msk [vmem:[#allocation2 + $0x8] sm:$0xff] %vm172_vm4, %v481_v0 }
  0xfc   : > { %v486_v1 = vld [vmem:[#allocation2] sm:$0xff] }
  0xfd   : > { %v553_v2 = vadd.f32 %v546_v53, %v486_v1 }
  0xff   : > { %555 = vst.msk [vmem:[#allocation2] sm:$0xff] %vm172_vm4, %v553_v2 }
 0x100   : > { %v487_v3 = vld [vmem:[#allocation2 + $0x8] sm:$0xff] }
 0x101   : > { %v554_v4 = vadd.f32 %v549_v56, %v487_v3 }
 0x103   : > { %556 = vst.msk [vmem:[#allocation2 + $0x8] sm:$0xff] %vm172_vm4, %v554_v4 }
 0x106   : > { %v557_v6 = vld [vmem:[#allocation2] sm:$0xff] }
 0x107   : > { %v566_v7 = vadd.f32 %v687_v5, %v557_v6 }
 0x109   : > { %vm568_vm5 = vcmp.ge.f32.partialorder %v566_v7, 0.0  ;;  %v570_v8 = vmul.f32 0.2, %v566_v7 }
 0x10a   : > { %v558_v9 = vld [vmem:[#allocation2 + $0x8] sm:$0xff] }
 0x10b   : > { %v572_v10 = vsel %vm568_vm5, %v566_v7, %v570_v8  ;;  %v567_v11 = vadd.f32 %v687_v5, %v558_v9 }
 0x10c   : > { %v693_v12 = vpack.c.bf16 %v572_v10, %v572_v10 }
 0x10d   : > { %vm569_vm7 = vcmp.ge.f32.partialorder %v567_v11, 0.0  ;;  %v571_v13 = vmul.f32 0.2, %v567_v11 }
 0x10e   : > { %583 = vst.msk [vmem:[%s170_s18] sm:$0xf] %vm582_vm6, %v693_v12 }
 0x10f   : > { %v573_v14 = vsel %vm569_vm7, %v567_v11, %v571_v13 }
 0x110   : > { %v694_v15 = vpack.c.bf16 %v573_v14, %v573_v14 }
 0x112   : > { %584 = vst.msk [vmem:[%s170_s18 + $0x4] sm:$0xf] %vm582_vm6, %v694_v15 }
 0x113 PF: > { %s13_s12 = sadd.s32 1, %s784_s12  }
 0x114   : > { %p10_p4 = scmp.ge.s32.totalorder %s13_s12, 4  }
 0x116   :  { %12 = sbr.rel (!%p10_p4) target bundleno = 1 (0x1), region = 67 }

// kernel: dis_conv_module.6
= control target key start
LH: loop header
LB: loop body
LE: loop exit
PB: predicated region body
PF: predicated region fallthrough
CT: control target
= control target key end

     0   :  { %s794_s12 = smov 0   ;;  %s912_s0 = inlined_call_operand.vmem [shape: bf16[2,2,8,40], index: 0, kind: input, shape index: {}]   ;;  %s913_s1 = inlined_call_operand.vmem [shape: bf16[5,40,16], index: 1, kind: input, shape index: {}]   ;;  %s914_s2 = inlined_call_operand.vmem [shape: f32[1,16], index: 2, kind: input, shape index: {}]   ;;  %s915_s3 = inlined_call_operand.vmem [shape: bf16[2,4,16], index: 3, kind: output, shape index: {}]  }
   0x1 LB: > { %s609_s13 = sadd.s32 4294967295, %s770_s12   ;;  %p613_p0 = scmp.ge.s32.totalorder %s770_s12, 1  ;;  %s770_s12 = sphi %s794_s12, %s13_s12  }
   0x2   : > { %p137_p1 = scmp.lt.s32.totalorder %s770_s12, 3 }
   0x4   : > { %p138_p2 = pnand %p613_p0, %p137_p1 }
   0x5   : > { %p160_p3 = scmp.lt.s32.totalorder (!%p138_p2), %s609_s13, 1 }
   0x6   : > { %141 = sbr.rel (%p138_p2) target bundleno = 276 (0x114), region = 32 }
   0xb   : > { %v746_v0 = vld [vmem:[%s913_s1 + $0x10] ss:$0 sps:$4 sm:$0xff]   ;;  %vm198_vm0 = vcmask 1043456   ;;  %v772_v1 = vmov 0.0   ;;  %v747_v3 = vld [vmem:[%s913_s1 + $0x8] sm:$0xff]   ;;  %vm773_vm1 = vmmov 0  }
   0xc   : > { %686 = vmatprep.subr.bf16.mxu0 %v772_v1  ;;  %696 = vmatprep.subr.bf16.mxu1 %v772_v1  ;;  %v200_v2 = vsel %vm198_vm0, %v746_v0, 0  ;;  %v748_v4 = vld [vmem:[%s913_s1 + $0x24] ss:$0 sps:$4 sm:$0xff]   ;;  %v750_v6 = vld [vmem:[%s913_s1 + $0x1c] sm:$0xff]   ;;  %vm170_vm2 = vcmask 125952   ;;  %s917_s13 = smov (!%p160_p3, %s609_s13), 1 }
   0xd   : > { %692 = vmatprep.mubr.msk.bf16.mxu0 %vm773_vm1, %v772_v1  ;;  %702 = vmatprep.mubr.msk.bf16.mxu1 %vm773_vm1, %v772_v1  ;;  %v272_v5 = vsel %vm198_vm0, %v748_v4, 0  ;;  %v749_v7 = vld [vmem:[%s913_s1] sm:$0xff]   ;;  %171 = vst.msk [vmem:[#allocation2] sm:$0xf] %vm170_vm2, %v772_v1  ;;  %s665_s24 = sshll.u32 %s917_s13, 3  ;;  %v751_v9 = vld [vmem:[%s913_s1 + $0x14] sm:$0xff]  }
   0xe   : > { %687 = vmatpush3.bf16.msra.mxu0 %v200_v2  ;;  %697 = vmatpush3.bf16.msra.mxu1 %v272_v5  ;;  %v752_v8 = vld [vmem:[%s913_s1 + $0x38] ss:$0 sps:$4 sm:$0xff]   ;;  %s839_s29 = scalar_lea.vmem %s912_s0, %s665_s24  ;;  %v755_v10 = vld [vmem:[%s913_s1 + $0x4c] ss:$0 sps:$4 sm:$0xff]   ;;  %vm194_vm3 = vcmask 326656   ;;  %v753_v15 = vld [vmem:[%s913_s1 + $0x30] sm:$0xff]  }
   0xf   : > { %688 = vmatprep.subr.bf16.mxu0 %v772_v1  ;;  %698 = vmatprep.subr.bf16.mxu1 %v772_v1  ;;  %v172_v11 = vld [vmem:[%s839_s29] sm:$0x3]  ;;  %v347_v12 = vsel %vm198_vm0, %v752_v8, 0  ;;  %v621_v13 = vld [vmem:[%s839_s29 + $0x4] sm:$0x3]  ;;  %v422_v14 = vsel %vm198_vm0, %v755_v10, 0 }
  0x10   : > { %v757_v16 = vld [vmem:[%s913_s1 + $0x44] sm:$0xff]   ;;  %v756_v17 = vld [vmem:[%s839_s29] ss:$0 sps:$4 sm:$0x66]   ;;  %v761_v25 = vld [vmem:[%s913_s1 + $0x58] sm:$0xff]   ;;  %s616_s25 = sshll.u32 %s917_s13, 1 }
  0x11   : > { %v754_v18 = vld [vmem:[%s913_s1 + $0x28] sm:$0xff]   ;;  %v759_v19 = vld [vmem:[%s913_s1 + $0x60] ss:$0 sps:$4 sm:$0xff]   ;;  %v760_v20 = vld [vmem:[%s839_s29 + $0x4] ss:$0 sps:$4 sm:$0x66]   ;;  %s168_s28 = scalar_lea.vmem %s915_s3, %s616_s25 }
  0x12   : > { %689 = vmatpush3.bf16.msra.mxu0 %v747_v3  ;;  %699 = vmatpush3.bf16.msra.mxu1 %v750_v6  ;;  %v758_v21 = vld [vmem:[%s913_s1 + $0x3c] sm:$0xff]   ;;  %v327_v22 = vrot.slane %v756_v17, 1  ;;  %v497_v23 = vsel %vm198_vm0, %v759_v19, 0  ;;  %v402_v24 = vrot.slane %v760_v20, 1  ;;  %v762_v27 = vld [vmem:[%s913_s1 + $0x50] sm:$0xff]   ;;  %vm554_vm5 = vcmask 123904  }
  0x13   : > { %690 = vmatprep.subr.bf16.mxu0 %v772_v1  ;;  %700 = vmatprep.subr.bf16.mxu1 %v772_v1  ;;  %v763_v26 = vld [vmem:[%s839_s29] ss:$0 sps:$4 sm:$0xcc]  }
  0x14   : > { %v477_v28 = vrot.slane %v763_v26, 2  ;;  %v173_v29 = vld [vmem:[#allocation2] sm:$0xf] }
  0x15   : > { %v662_v59 = vld [vmem:[%s914_s2] ss:$0 sm:$0xff] }
  0x16   : > { %691 = vmatpush3.bf16.msra.mxu0 %v749_v7  ;;  %701 = vmatpush3.bf16.msra.mxu1 %v751_v9 }
  0x17   : > { %706 = vmatprep.subr.bf16.mxu0 %v772_v1  ;;  %716 = vmatprep.subr.bf16.mxu1 %v772_v1 }
  0x19   : > { %693 = vmatmul.mubr.msk.bf16.vlgmr.msra.gmra.mxu0 %vm194_vm3, %v172_v11  ;;  %703 = vmatmul.mubr.msk.bf16.vlgmr.msra.gmra.mxu1 %vm194_vm3, %v621_v13 }
  0x1a   : > { %707 = vmatpush3.bf16.msra.mxu0 %v347_v12  ;;  %712 = vmatprep.mubr.msk.bf16.mxu0 %vm773_vm1, %v772_v1 }
  0x1b   : > { %708 = vmatprep.subr.bf16.mxu0 %v772_v1  ;;  %717 = vmatpush3.bf16.msra.mxu1 %v422_v14 }
  0x1c   : > { %722 = vmatprep.mubr.msk.bf16.mxu1 %vm773_vm1, %v772_v1  ;;  %718 = vmatprep.subr.bf16.mxu1 %v772_v1 }
  0x1e   : > { %709 = vmatpush3.bf16.msra.mxu0 %v753_v15 }
  0x1f   : > { %710 = vmatprep.subr.bf16.mxu0 %v772_v1  ;;  %719 = vmatpush3.bf16.msra.mxu1 %v757_v16 }
  0x20   : > { %720 = vmatprep.subr.bf16.mxu1 %v772_v1 }
  0x22   : > { %711 = vmatpush3.bf16.msra.mxu0 %v754_v18 }
  0x23   : > { %726 = vmatprep.subr.bf16.mxu0 %v772_v1  ;;  %721 = vmatpush3.bf16.msra.mxu1 %v758_v21 }
  0x25   : > { %713 = vmatmul.mubr.msk.bf16.vlgmr.msra.gmra.mxu0 %vm194_vm3, %v327_v22 }
  0x26   : > { %727 = vmatpush3.bf16.msra.mxu0 %v497_v23  ;;  %732 = vmatprep.mubr.msk.bf16.mxu0 %vm773_vm1, %v772_v1 }
  0x27   : > { %723 = vmatmul.mubr.msk.bf16.vlgmr.msra.gmra.mxu1 %vm194_vm3, %v402_v24  ;;  %728 = vmatprep.subr.bf16.mxu0 %v772_v1 }
  0x2a   : > { %729 = vmatpush3.bf16.msra.mxu0 %v761_v25 }
  0x2b   : > { %730 = vmatprep.subr.bf16.mxu0 %v772_v1 }
  0x2e   : > { %731 = vmatpush3.bf16.msra.mxu0 %v762_v27 }
  0x31   : > { %733 = vmatmul.mubr.msk.bf16.vlgmr.msra.gmra.mxu0 %vm194_vm3, %v477_v28 }
  0xd9   : > { %v236_v30 = vpop.f32.mrf.mxu0  ;;  %v308_v33 = vpop.f32.mrf.mxu1 }
  0xda   : > { %v242_v31 = vadd.f32 %v236_v30, %v173_v29 }
  0xdb   : > { %v694_v32 = vpop.f32.mrf.mxu0  ;;  %v704_v35 = vpop.f32.mrf.mxu1 }
  0xdc   : > { %243 = vst.msk [vmem:[#allocation2] sm:$0xf] %vm170_vm2, %v242_v31 }
  0xdd   : > { %v239_v34 = vpop.f32.mrf.mxu0  ;;  %v311_v37 = vpop.f32.mrf.mxu1 }
  0xdf   : > { %v695_v36 = vpop.f32.mrf.mxu0  ;;  %v705_v38 = vpop.f32.mrf.mxu1 }
  0xe3   : > { %v246_v39 = vld [vmem:[#allocation2] sm:$0xf] }
  0xe4   : > { %v314_v40 = vadd.f32 %v308_v33, %v246_v39 }
  0xe5   : > { %v383_v41 = vpop.f32.mrf.mxu0 }
  0xe6   : > { %315 = vst.msk [vmem:[#allocation2] sm:$0xf] %vm170_vm2, %v314_v40 }
  0xe7   : > { %v714_v42 = vpop.f32.mrf.mxu0  ;;  %v458_v43 = vpop.f32.mrf.mxu1 }
  0xe9   : > { %v386_v44 = vpop.f32.mrf.mxu0  ;;  %v724_v45 = vpop.f32.mrf.mxu1 }
  0xeb   : > { %v715_v46 = vpop.f32.mrf.mxu0  ;;  %v461_v47 = vpop.f32.mrf.mxu1 }
  0xed   : > { %v317_v48 = vld [vmem:[#allocation2] sm:$0xf]  ;;  %v725_v49 = vpop.f32.mrf.mxu1 }
  0xee   : > { %v389_v50 = vadd.f32 %v383_v41, %v317_v48 }
  0xf0   : > { %390 = vst.msk [vmem:[#allocation2] sm:$0xf] %vm170_vm2, %v389_v50 }
  0xf1   : > { %v533_v51 = vpop.f32.mrf.mxu0 }
  0xf3   : > { %v734_v52 = vpop.f32.mrf.mxu0 }
  0xf5   : > { %v536_v53 = vpop.f32.mrf.mxu0 }
  0xf7   : > { %v392_v54 = vld [vmem:[#allocation2] sm:$0xf]  ;;  %v735_v55 = vpop.f32.mrf.mxu0 }
  0xf8   : > { %v464_v56 = vadd.f32 %v458_v43, %v392_v54 }
  0xfa   : > { %465 = vst.msk [vmem:[#allocation2] sm:$0xf] %vm170_vm2, %v464_v56 }
 0x101   : > { %v467_v57 = vld [vmem:[#allocation2] sm:$0xf] }
 0x102   : > { %v539_v58 = vadd.f32 %v533_v51, %v467_v57 }
 0x104   : > { %540 = vst.msk [vmem:[#allocation2] sm:$0xf] %vm170_vm2, %v539_v58 }
 0x10b   : > { %v541_v60 = vld [vmem:[#allocation2] sm:$0xf] }
 0x10c   : > { %v549_v61 = vadd.f32 %v662_v59, %v541_v60 }
 0x10e   : > { %vm550_vm4 = vcmp.ge.f32.partialorder %v549_v61, 0.0  ;;  %v551_v62 = vmul.f32 0.2, %v549_v61 }
 0x110   : > { %v552_v63 = vsel %vm550_vm4, %v549_v61, %v551_v62 }
 0x111   : > { %v553_v0 = vpack.c.bf16 %v552_v63, %v552_v63 }
 0x113   : > { %555 = vst.msk [vmem:[%s168_s28] sm:$0x3] %vm554_vm5, %v553_v0 }
 0x114 PF: > { %s13_s12 = sadd.s32 1, %s770_s12  }
 0x115   : > { %p10_p4 = scmp.ge.s32.totalorder %s13_s12, 4  }
 0x117   :  { %12 = sbr.rel (!%p10_p4) target bundleno = 1 (0x1), region = 67 }

// kernel: dis_conv_module.7
= control target key start
LH: loop header
LB: loop body
LE: loop exit
PB: predicated region body
PF: predicated region fallthrough
CT: control target
= control target key end

     0   :  { %s952_s12 = smov 0   ;;  %s1106_s0 = inlined_call_operand.vmem [shape: bf16[2,2,3,80], index: 0, kind: input, shape index: {}]   ;;  %s1107_s1 = inlined_call_operand.vmem [shape: bf16[5,80,16], index: 1, kind: input, shape index: {}]   ;;  %s1108_s2 = inlined_call_operand.vmem [shape: f32[1,16], index: 2, kind: input, shape index: {}]   ;;  %s1109_s3 = inlined_call_operand.vmem [shape: bf16[2,1,16], index: 3, kind: output, shape index: {}]  }
   0x1 LB: > { %s702_s13 = sadd.s32 4294967295, %s928_s12   ;;  %p706_p0 = scmp.ge.s32.totalorder %s928_s12, 1  ;;  %s928_s12 = sphi %s952_s12, %s13_s12  }
   0x2   : > { %p137_p1 = scmp.lt.s32.totalorder %s928_s12, 3 }
   0x4   : > { %p138_p2 = pnand %p706_p0, %p137_p1 }
   0x5   : > { %p159_p3 = scmp.lt.s32.totalorder (!%p138_p2), %s702_s13, 1 }
   0x6   : > { %141 = sbr.rel (%p138_p2) target bundleno = 284 (0x11c), region = 32 }
   0xb   : > { %v897_v0 = vld [vmem:[%s1107_s1 + $0x20] sm:$0xff]   ;;  %v930_v1 = vmov 0.0   ;;  %v898_v2 = vld [vmem:[%s1107_s1 + $0x18] sm:$0xff]   ;;  %v899_v3 = vld [vmem:[%s1107_s1 + $0x48] sm:$0xff]   ;;  %vm931_vm0 = vmmov 0   ;;  %vm168_vm1 = vcmask 122880  }
   0xc   : > { %817 = vmatprep.subr.bf16.mxu0 %v930_v1  ;;  %831 = vmatprep.subr.bf16.mxu1 %v930_v1  ;;  %v901_v4 = vld [vmem:[%s1107_s1 + $0x40] sm:$0xff]   ;;  %v900_v5 = vld [vmem:[%s1107_s1 + $0x10] sm:$0xff]   ;;  %169 = vst.msk [vmem:[#allocation2] sm:$0x1] %vm168_vm1, %v930_v1  ;;  %s1111_s13 = smov (!%p159_p3, %s702_s13), 1  ;;  %v903_v6 = vld [vmem:[%s1107_s1 + $0x38] sm:$0xff]  }
   0xd   : > { %818 = vmatpush3.bf16.msra.mxu0 %v897_v0  ;;  %827 = vmatprep.mubr.msk.bf16.mxu0 %vm931_vm0, %v930_v1  ;;  %v902_v7 = vld [vmem:[%s1107_s1 + $0x8] sm:$0xff]   ;;  %s786_s28 = sshll.u32 %s1111_s13, 2  ;;  %v905_v8 = vld [vmem:[%s1107_s1 + $0x30] sm:$0xff]   ;;  %v904_v9 = vld [vmem:[%s1107_s1] sm:$0xff]   ;;  %vm212_vm2 = vcmask 654336   ;;  %s166_s22 = scalar_lea.vmem %s1109_s3, %s1111_s13 }
   0xe   : > { %819 = vmatprep.subr.bf16.mxu0 %v930_v1  ;;  %841 = vmatprep.mubr.msk.bf16.mxu1 %vm931_vm0, %v930_v1  ;;  %s1007_s8 = scalar_lea.vmem %s1106_s0, %s786_s28  ;;  %v906_v10 = vld [vmem:[%s1107_s1 + $0x28] sm:$0xff]   ;;  %v907_v12 = vld [vmem:[%s1107_s1 + $0x70] sm:$0xff]   ;;  %v909_v14 = vld [vmem:[%s1107_s1 + $0x98] sm:$0xff]   ;;  %vm650_vm3 = vsmask.f32 256 }
   0xf   : > { %832 = vmatpush3.bf16.msra.mxu1 %v899_v3  ;;  %v170_v11 = vld [vmem:[%s1007_s8] sm:$0x1]  ;;  %v715_v13 = vld [vmem:[%s1007_s8 + $0x2] sm:$0x1]  ;;  %v908_v15 = vld [vmem:[%s1107_s1 + $0x68] sm:$0xff]  }
  0x10   : > { %833 = vmatprep.subr.bf16.mxu1 %v930_v1  ;;  %v911_v16 = vld [vmem:[%s1107_s1 + $0x90] sm:$0xff]   ;;  %v910_v17 = vld [vmem:[%s1107_s1 + $0x60] sm:$0xff]   ;;  %v913_v18 = vld [vmem:[%s1107_s1 + $0x88] sm:$0xff]  }
  0x11   : > { %820 = vmatpush3.bf16.msra.mxu0 %v898_v2  ;;  %v912_v19 = vld [vmem:[%s1107_s1 + $0x58] sm:$0xff]   ;;  %v915_v20 = vld [vmem:[%s1107_s1 + $0x80] sm:$0xff]   ;;  %v914_v21 = vld [vmem:[%s1107_s1 + $0x50] sm:$0xff]  }
  0x12   : > { %821 = vmatprep.subr.bf16.mxu0 %v930_v1  ;;  %v742_v22 = vld.sshfl [vmem:[%s1007_s8] sm:$0x1 pattern:$0x76325410]  ;;  %v916_v23 = vld [vmem:[%s1107_s1 + $0x78] sm:$0xff]   ;;  %v919_v29 = vld [vmem:[%s1107_s1 + $0xb0] sm:$0xff]  }
  0x13   : > { %834 = vmatpush3.bf16.msra.mxu1 %v901_v4  ;;  %v760_v24 = vld.sshfl [vmem:[%s1007_s8 + $0x2] sm:$0x1 pattern:$0x76325410]  ;;  %v369_v25 = vshrl.u32 %v742_v22, 16  ;;  %v918_v28 = vld [vmem:[%s1107_s1 + $0xb8] sm:$0xff]   ;;  %vm651_vm5 = vmand %vm168_vm1, %vm650_vm3 }
  0x14   : > { %835 = vmatprep.subr.bf16.mxu1 %v930_v1  ;;  %v917_v26 = vld [vmem:[%s1107_s1 + $0xc0] sm:$0xff]   ;;  %v468_v27 = vshrl.u32 %v760_v24, 16  ;;  %v920_v30 = vld [vmem:[%s1107_s1 + $0xa8] sm:$0xff]  }
  0x15   : > { %822 = vmatpush3.bf16.msra.mxu0 %v900_v5  ;;  %v921_v31 = vld [vmem:[%s1107_s1 + $0xa0] sm:$0xff]  }
  0x16   : > { %823 = vmatprep.subr.bf16.mxu0 %v930_v1  ;;  %v777_v32 = vld.sshfl [vmem:[%s1007_s8] sm:$0x2 pattern:$0x76325410]  ;;  %v171_v34 = vld [vmem:[#allocation2] sm:$0x1] }
  0x17   : > { %836 = vmatpush3.bf16.msra.mxu1 %v903_v6  ;;  %v566_v33 = vrot.slane %v777_v32, 1  ;;  %v643_v0 = vld [vmem:[%s1108_s2] sm:$0x1] }
  0x18   : > { %837 = vmatprep.subr.bf16.mxu1 %v930_v1  ;;  %v652_v4 = vld [vmem:[%s166_s22] sm:$0x1] }
  0x19   : > { %824 = vmatpush3.bf16.msra.mxu0 %v902_v7 }
  0x1a   : > { %825 = vmatprep.subr.bf16.mxu0 %v930_v1 }
  0x1b   : > { %838 = vmatpush3.bf16.msra.mxu1 %v905_v8 }
  0x1c   : > { %839 = vmatprep.subr.bf16.mxu1 %v930_v1 }
  0x1d   : > { %826 = vmatpush3.bf16.msra.mxu0 %v904_v9 }
  0x1e   : > { %845 = vmatprep.subr.bf16.mxu0 %v930_v1 }
  0x1f   : > { %840 = vmatpush3.bf16.msra.mxu1 %v906_v10 }
  0x20   : > { %828 = vmatmul.mubr.msk.bf16.vlgmr.msra.gmra.mxu0 %vm212_vm2, %v170_v11  ;;  %859 = vmatprep.subr.bf16.mxu1 %v930_v1 }
  0x21   : > { %846 = vmatpush3.bf16.msra.mxu0 %v907_v12  ;;  %855 = vmatprep.mubr.msk.bf16.mxu0 %vm931_vm0, %v930_v1 }
  0x22   : > { %842 = vmatmul.mubr.msk.bf16.vlgmr.msra.gmra.mxu1 %vm212_vm2, %v715_v13  ;;  %847 = vmatprep.subr.bf16.mxu0 %v930_v1 }
  0x23   : > { %860 = vmatpush3.bf16.msra.mxu1 %v909_v14  ;;  %869 = vmatprep.mubr.msk.bf16.mxu1 %vm931_vm0, %v930_v1 }
  0x24   : > { %861 = vmatprep.subr.bf16.mxu1 %v930_v1 }
  0x25   : > { %848 = vmatpush3.bf16.msra.mxu0 %v908_v15 }
  0x26   : > { %849 = vmatprep.subr.bf16.mxu0 %v930_v1 }
  0x27   : > { %862 = vmatpush3.bf16.msra.mxu1 %v911_v16 }
  0x28   : > { %863 = vmatprep.subr.bf16.mxu1 %v930_v1 }
  0x29   : > { %850 = vmatpush3.bf16.msra.mxu0 %v910_v17 }
  0x2a   : > { %851 = vmatprep.subr.bf16.mxu0 %v930_v1 }
  0x2b   : > { %864 = vmatpush3.bf16.msra.mxu1 %v913_v18 }
  0x2c   : > { %865 = vmatprep.subr.bf16.mxu1 %v930_v1 }
  0x2d   : > { %852 = vmatpush3.bf16.msra.mxu0 %v912_v19 }
  0x2e   : > { %853 = vmatprep.subr.bf16.mxu0 %v930_v1 }
  0x2f   : > { %866 = vmatpush3.bf16.msra.mxu1 %v915_v20 }
  0x30   : > { %867 = vmatprep.subr.bf16.mxu1 %v930_v1 }
  0x31   : > { %854 = vmatpush3.bf16.msra.mxu0 %v914_v21 }
  0x32   : > { %873 = vmatprep.subr.bf16.mxu0 %v930_v1 }
  0x33   : > { %868 = vmatpush3.bf16.msra.mxu1 %v916_v23 }
  0x34   : > { %856 = vmatmul.mubr.msk.bf16.vlgmr.msra.gmra.mxu0 %vm212_vm2, %v369_v25 }
  0x35   : > { %874 = vmatpush3.bf16.msra.mxu0 %v917_v26  ;;  %883 = vmatprep.mubr.msk.bf16.mxu0 %vm931_vm0, %v930_v1 }
  0x36   : > { %870 = vmatmul.mubr.msk.bf16.vlgmr.msra.gmra.mxu1 %vm212_vm2, %v468_v27  ;;  %875 = vmatprep.subr.bf16.mxu0 %v930_v1 }
  0x39   : > { %876 = vmatpush3.bf16.msra.mxu0 %v918_v28 }
  0x3a   : > { %877 = vmatprep.subr.bf16.mxu0 %v930_v1 }
  0x3d   : > { %878 = vmatpush3.bf16.msra.mxu0 %v919_v29 }
  0x3e   : > { %879 = vmatprep.subr.bf16.mxu0 %v930_v1 }
  0x41   : > { %880 = vmatpush3.bf16.msra.mxu0 %v920_v30 }
  0x42   : > { %881 = vmatprep.subr.bf16.mxu0 %v930_v1 }
  0x45   : > { %882 = vmatpush3.bf16.msra.mxu0 %v921_v31 }
  0x48   : > { %884 = vmatmul.mubr.msk.bf16.vlgmr.msra.gmra.mxu0 %vm212_vm2, %v566_v33 }
  0xe0   : > { %v250_v35 = vpop.f32.mrf.mxu0 }
  0xe1   : > { %v256_v36 = vadd.f32 %v250_v35, %v171_v34 }
  0xe2   : > { %v829_v37 = vpop.f32.mrf.mxu0  ;;  %v339_v38 = vpop.f32.mrf.mxu1 }
  0xe3   : > { %257 = vst.msk [vmem:[#allocation2] sm:$0x1] %vm168_vm1, %v256_v36 }
  0xe4   : > { %v253_v39 = vpop.f32.mrf.mxu0  ;;  %v843_v40 = vpop.f32.mrf.mxu1 }
  0xe6   : > { %v830_v41 = vpop.f32.mrf.mxu0  ;;  %v342_v42 = vpop.f32.mrf.mxu1 }
  0xe8   : > { %v844_v43 = vpop.f32.mrf.mxu1 }
  0xea   : > { %v260_v44 = vld [vmem:[#allocation2] sm:$0x1] }
  0xeb   : > { %v345_v45 = vadd.f32 %v339_v38, %v260_v44 }
  0xed   : > { %346 = vst.msk [vmem:[#allocation2] sm:$0x1] %vm168_vm1, %v345_v45 }
  0xf4   : > { %v348_v46 = vld [vmem:[#allocation2] sm:$0x1]  ;;  %v438_v47 = vpop.f32.mrf.mxu0 }
  0xf5   : > { %v444_v48 = vadd.f32 %v438_v47, %v348_v46 }
  0xf6   : > { %v857_v49 = vpop.f32.mrf.mxu0  ;;  %v537_v50 = vpop.f32.mrf.mxu1 }
  0xf7   : > { %445 = vst.msk [vmem:[#allocation2] sm:$0x1] %vm168_vm1, %v444_v48 }
  0xf8   : > { %v441_v51 = vpop.f32.mrf.mxu0  ;;  %v871_v52 = vpop.f32.mrf.mxu1 }
  0xfa   : > { %v858_v53 = vpop.f32.mrf.mxu0  ;;  %v540_v54 = vpop.f32.mrf.mxu1 }
  0xfc   : > { %v872_v55 = vpop.f32.mrf.mxu1 }
  0xfe   : > { %v447_v56 = vld [vmem:[#allocation2] sm:$0x1] }
  0xff   : > { %v543_v57 = vadd.f32 %v537_v50, %v447_v56 }
 0x101   : > { %544 = vst.msk [vmem:[#allocation2] sm:$0x1] %vm168_vm1, %v543_v57 }
 0x108   : > { %v546_v58 = vld [vmem:[#allocation2] sm:$0x1]  ;;  %v634_v59 = vpop.f32.mrf.mxu0 }
 0x109   : > { %v640_v60 = vadd.f32 %v634_v59, %v546_v58 }
 0x10a   : > { %v885_v61 = vpop.f32.mrf.mxu0 }
 0x10b   : > { %641 = vst.msk [vmem:[#allocation2] sm:$0x1] %vm168_vm1, %v640_v60 }
 0x10c   : > { %v637_v62 = vpop.f32.mrf.mxu0 }
 0x10e   : > { %v886_v63 = vpop.f32.mrf.mxu0 }
 0x112   : > { %v642_v1 = vld [vmem:[#allocation2] sm:$0x1] }
 0x113   : > { %v644_v2 = vadd.f32 %v643_v0, %v642_v1 }
 0x115   : > { %vm645_vm4 = vcmp.ge.f32.partialorder %v644_v2, 0.0  ;;  %v646_v3 = vmul.f32 0.2, %v644_v2 }
 0x117   : > { %v647_v5 = vsel %vm645_vm4, %v644_v2, %v646_v3 }
 0x118   : > { %v648_v6 = vpack.c.bf16 %v647_v5, %v647_v5 }
 0x11a   : > { %v653_v7 = vsel %vm651_vm5, %v648_v6, %v652_v4 }
 0x11b   : > { %654 = vst [vmem:[%s166_s22] sm:$0x1] %v653_v7 }
 0x11c PF: > { %s13_s12 = sadd.s32 1, %s928_s12  }
 0x11d   : > { %p10_p4 = scmp.ge.s32.totalorder %s13_s12, 4  }
 0x11f   :  { %12 = sbr.rel (!%p10_p4) target bundleno = 1 (0x1), region = 67 }

</bundles_post_ra>
